<compile_context>
chip_gen: v6e
topology: v6e:2x2x1
jax: 0.10.0
libtpu: 0.0.40
codegen_flags: <defaults>
</compile_context>

<pallas_src>
import functools

import jax
import jax.numpy as jnp
from jax.experimental import pallas as pl
from jax.experimental.pallas import tpu as pltpu

LANE = 128     # vreg lane width
SUBLANE = 8    # vreg sublane count (32-bit)


def _round_up(x, m):
    return (x + m - 1) // m * m


# ------------------------------------------------------------------
# Fused forward kernel
#   tok_ref : VMEM (T*Bp, 1) int32        time-major flattened token ids
#   wih_ref : VMEM (Vp, 3*Hp) f32         input-projection table, b_ih folded
#   whh_ref : VMEM (Hp, 3*Hp) bf16        fused hidden-projection weights
#   bhh_ref : VMEM (1, 3*Hp) f32
#   dw_ref  : VMEM (L, Hp, Hp) bf16       mu head + MLP weights (zero padded)
#   db_ref  : VMEM (L, Hp) f32
#   out_ref : VMEM (Bp, Hp) f32           classifier output (lane-dense)
#   gi_scr  : VMEM (T*Bp, 3*Hp) f32       all-timestep input projections
# ------------------------------------------------------------------
def _rnn_pretrain_kernel(tok_ref, wih_ref, whh_ref, bhh_ref, dw_ref, db_ref,
                         out_ref, gi_scr, *, seq_len, batch_p, vocab_p, hp,
                         relu_flags):
    g3 = 3 * hp
    tb = seq_len * batch_p

    # ---- input projection for ALL timesteps as one one-hot matmul (exact:
    #      each output element selects a single f32 row, no rounding) --------
    tok = tok_ref[...]                                              # (T*Bp, 1)
    iota = jax.lax.broadcasted_iota(jnp.int32, (tb, vocab_p), 1)
    onehot = (iota == tok).astype(jnp.float32)                      # (T*Bp, Vp)
    gi_scr[...] = jnp.dot(onehot, wih_ref[...],
                          preferred_element_type=jnp.float32)       # (T*Bp, 3Hp)

    bhh = bhh_ref[...]                                              # (1, 3Hp)

    # ---- GRU recurrence: pure MXU + VPU/EUP work per step ------------------
    h = jnp.zeros((batch_p, hp), jnp.float32)
    for t in range(seq_len):                                        # unrolled
        gi = gi_scr[pl.ds(t * batch_p, batch_p), :]                 # static slice
        gh = jnp.dot(h.astype(jnp.bfloat16), whh_ref[...],
                     preferred_element_type=jnp.float32) + bhh
        # PyTorch GRU gate order [r | z | n] in lane-aligned 128-wide blocks
        rz = jax.nn.sigmoid(gi[:, :2 * hp] + gh[:, :2 * hp])        # one EUP pass
        r = rz[:, :hp]
        z = rz[:, hp:]
        n = jnp.tanh(gi[:, 2 * hp:] + r * gh[:, 2 * hp:])
        h = (1.0 - z) * n + z * h

    # ---- mu head (no ReLU) + MLP hidden layers (ReLU) + final layer --------
    # Classifier dropout is an eval-mode no-op.
    a = h
    for layer, use_relu in enumerate(relu_flags):
        a = jnp.dot(a.astype(jnp.bfloat16), dw_ref[layer],
                    preferred_element_type=jnp.float32) \
            + db_ref[pl.ds(layer, 1), :]
        if use_relu:
            a = jnp.maximum(a, 0.0)
    out_ref[...] = a


# ------------------------------------------------------------------
# Wrapper
# ------------------------------------------------------------------
def rnn_pretrain_forward(params, tokens):
    """tokens: (B, T) int32 ids.  Returns classifier output (B, out_dim)."""
    B, T = tokens.shape
    cfg = params["cfg"]
    wih = params["wih"]
    Vp = wih.shape[0]
    Hp = params["whh"].shape[0]
    g3 = params["whh"].shape[1]
    L = params["dense_w"].shape[0]
    Bp = _round_up(max(B, SUBLANE), SUBLANE)

    # time-major, batch-padded, flattened ids: row t*Bp + b  <->  tokens[b, t]
    tok_tb = jnp.zeros((T, Bp), jnp.int32).at[:, :B].set(tokens.astype(jnp.int32).T)
    tok_flat = tok_tb.reshape(T * Bp, 1)

    kernel = functools.partial(
        _rnn_pretrain_kernel,
        seq_len=T, batch_p=Bp, vocab_p=Vp, hp=Hp,
        relu_flags=cfg["relu_flags"])

    out = pl.pallas_call(
        kernel,
        out_shape=jax.ShapeDtypeStruct((Bp, Hp), jnp.float32),
        grid=(1,),
        in_specs=[
            pl.BlockSpec((T * Bp, 1), lambda i: (0, 0)),     # token ids
            pl.BlockSpec((Vp, g3), lambda i: (0, 0)),        # wih (bias folded)
            pl.BlockSpec((Hp, g3), lambda i: (0, 0)),        # whh
            pl.BlockSpec((1, g3), lambda i: (0, 0)),         # bhh
            pl.BlockSpec((L, Hp, Hp), lambda i: (0, 0, 0)),  # dense_w
            pl.BlockSpec((L, Hp), lambda i: (0, 0)),         # dense_b
        ],
        out_specs=pl.BlockSpec((Bp, Hp), lambda i: (0, 0)),
        scratch_shapes=[pltpu.VMEM((T * Bp, g3), jnp.float32)],
        compiler_params=pltpu.CompilerParams(
            dimension_semantics=("arbitrary",)),
    )(tok_flat, wih, params["whh"], params["bhh"],
      params["dense_w"], params["dense_b"])

    return out[:B, :cfg["out_dim"]]


# ------------------------------------------------------------------
# Pure-JAX reference (f32 weights upcast from the same params) for validation.
# ------------------------------------------------------------------
def _reference_forward(params, tokens):
    wih = params["wih"]
    whh = params["whh"].astype(jnp.float32)
    bhh = params["bhh"]
    dw = params["dense_w"].astype(jnp.float32)
    db = params["dense_b"]
    cfg = params["cfg"]
    Hp = whh.shape[0]
    B, T = tokens.shape
    h = jnp.zeros((B, Hp), jnp.float32)
    for t in range(T):
        gi = wih[tokens[:, t]]
        gh = h @ whh + bhh
        r = jax.nn.sigmoid(gi[:, :Hp] + gh[:, :Hp])
        z = jax.nn.sigmoid(gi[:, Hp:2 * Hp] + gh[:, Hp:2 * Hp])
        n = jnp.tanh(gi[:, 2 * Hp:] + r * gh[:, 2 * Hp:])
        h = (1.0 - z) * n + z * h
    a = h
    for layer, use_relu in enumerate(cfg["relu_flags"]):
        a = a @ dw[layer] + db[layer][None, :]
        if use_relu:
            a = jnp.maximum(a, 0.0)
    return a[:, :cfg["out_dim"]]


# ------------------------------------------------------------------
# Deterministic synthetic parameters (shapes mirror the PyTorch module;
# padded / gate-fused / bf16 layouts are built here once).
# ------------------------------------------------------------------
def init_params(key, *, n_vocab, gru_dim, z_dim, out_dim, mlp_hid_dims):
    Hp = _round_up(max(gru_dim, z_dim, out_dim, *mlp_hid_dims), LANE)
    Vp = _round_up(n_vocab, LANE)
    g3 = 3 * Hp
    ks = iter(jax.random.split(key, 32))

    def rnd(shape, scale=0.1):
        return (scale * jax.random.normal(next(ks), shape)).astype(jnp.float32)

    # encoder GRU weights, PyTorch gate order [r, z, n]
    w_ih = rnd((3, n_vocab, gru_dim))
    w_hh = rnd((3, gru_dim, gru_dim))
    b_ih = rnd((3, gru_dim), 0.01)
    b_hh = rnd((3, gru_dim), 0.01)

    # bias-folded, lane-padded projection table and fused hidden weights
    wih = jnp.zeros((Vp, g3), jnp.float32)
    whh = jnp.zeros((Hp, g3), jnp.float32)
    bhh = jnp.zeros((1, g3), jnp.float32)
    for g in range(3):
        c0 = g * Hp
        wih = wih.at[:n_vocab, c0:c0 + gru_dim].set(w_ih[g] + b_ih[g][None, :])
        whh = whh.at[:gru_dim, c0:c0 + gru_dim].set(w_hh[g])
        bhh = bhh.at[0, c0:c0 + gru_dim].set(b_hh[g])

    # mu head + MLP classifier, stacked and zero-padded to (Hp, Hp) tiles
    layer_dims = [(gru_dim, z_dim)]          # mu head (no activation)
    prev = z_dim
    for hdim in mlp_hid_dims:                # hidden layers (ReLU)
        layer_dims.append((prev, hdim))
        prev = hdim
    layer_dims.append((prev, out_dim))       # final layer (no activation)
    L = len(layer_dims)
    dw = jnp.zeros((L, Hp, Hp), jnp.float32)
    db = jnp.zeros((L, Hp), jnp.float32)
    for layer, (din, dout) in enumerate(layer_dims):
        dw = dw.at[layer, :din, :dout].set(rnd((din, dout)))
        db = db.at[layer, :dout].set(rnd((dout,), 0.01))

    relu_flags = (False,) + (True,) * len(mlp_hid_dims) + (False,)

    return {
        "wih": wih,                               # f32 (exact one-hot gather)
        "whh": whh.astype(jnp.bfloat16),          # bf16 MXU operand
        "bhh": bhh,
        "dense_w": dw.astype(jnp.bfloat16),       # bf16 MXU operands
        "dense_b": db,
        "cfg": {"out_dim": out_dim, "relu_flags": relu_flags},
    }


# ------------------------------------------------------------------
if __name__ == "__main__":
    # Config consistent with the module: vocab=16 (incl. <pad>), seq_len=8,
    # batch=4, GRU_dim=32, z_dim=16, out_dim=1, MLP_hid_dims=[128,64,32,16],
    # num_layers=1, Bidirect=False.  Equal-length sequences -> pack_sequence
    # is a no-op; dropout is an eval-mode identity.
    V, T, B = 16, 8, 4
    GRU_DIM, Z_DIM, OUT_DIM = 32, 16, 1
    MLP_HID = [128, 64, 32, 16]

    root = jax.random.PRNGKey(0)
    k_par, k_tok = jax.random.split(root)

    params = init_params(k_par, n_vocab=V, gru_dim=GRU_DIM, z_dim=Z_DIM,
                         out_dim=OUT_DIM, mlp_hid_dims=MLP_HID)

    # token ids in [0, V-2] (last id is <pad>, unused for equal-length batch)
    tokens = jax.random.randint(k_tok, (B, T), 0, V - 1, dtype=jnp.int32)

    y = rnn_pretrain_forward(params, tokens)
    jax.block_until_ready(y)
    assert y.shape == (B, OUT_DIM)

    # loose-tolerance check vs. f32 reference (bf16 MXU operands in-kernel)
    ref = _reference_forward(params, tokens)
    assert jnp.allclose(y, ref, atol=5e-2, rtol=5e-2), (y, ref)

    print("KERNEL_OK")
</pallas_src>

<mosaic_0001>
module attributes {stable_mosaic.version = 11 : i64} {
  func.func @_rnn_pretrain_kernel(%arg0: i32, %arg1: memref<64x1xi32, #tpu.memory_space<vmem>>, %arg2: memref<128x384xf32, #tpu.memory_space<vmem>>, %arg3: memref<128x384xbf16, #tpu.memory_space<vmem>>, %arg4: memref<1x384xf32, #tpu.memory_space<vmem>>, %arg5: memref<6x128x128xbf16, #tpu.memory_space<vmem>>, %arg6: memref<6x128xf32, #tpu.memory_space<vmem>>, %arg7: memref<8x128xf32, #tpu.memory_space<vmem>>, %arg8: memref<64x384xf32, #tpu.memory_space<vmem>>) attributes {dimension_semantics = [#tpu.dimension_semantics<arbitrary>], iteration_bounds = array<i64: 1>, scalar_prefetch = 0 : i64, scratch_operands = 1 : i64, tpu.core_type = #tpu.core_type<tc>, window_params = [{pipeline_mode = #tpu.pipeline_mode<synchronous>, transform_indices = @transform_0, window_bounds = array<i64: 64, 1>}, {pipeline_mode = #tpu.pipeline_mode<synchronous>, transform_indices = @transform_1, window_bounds = array<i64: 128, 384>}, {pipeline_mode = #tpu.pipeline_mode<synchronous>, transform_indices = @transform_2, window_bounds = array<i64: 128, 384>}, {pipeline_mode = #tpu.pipeline_mode<synchronous>, transform_indices = @transform_3, window_bounds = array<i64: 1, 384>}, {pipeline_mode = #tpu.pipeline_mode<synchronous>, transform_indices = @transform_4, window_bounds = array<i64: 6, 128, 128>}, {pipeline_mode = #tpu.pipeline_mode<synchronous>, transform_indices = @transform_5, window_bounds = array<i64: 6, 128>}, {pipeline_mode = #tpu.pipeline_mode<synchronous>, transform_indices = @transform_6, window_bounds = array<i64: 8, 128>}]} {
    %c0 = arith.constant 0 : index
    %c0_0 = arith.constant 0 : index
    %0 = vector.load %arg1[%c0, %c0_0] : memref<64x1xi32, #tpu.memory_space<vmem>>, vector<64x1xi32>
    %1 = tpu.iota {dimensions = array<i32: 1>} : vector<64x128xi32>
    %2 = vector.broadcast %0 : vector<64x1xi32> to vector<64x128xi32>
    %3 = arith.cmpi eq, %1, %2 : vector<64x128xi32>
    %4 = arith.extui %3 : vector<64x128xi1> to vector<64x128xi32>
    %5 = arith.sitofp %4 : vector<64x128xi32> to vector<64x128xf32>
    %c0_1 = arith.constant 0 : index
    %c0_2 = arith.constant 0 : index
    %6 = vector.load %arg2[%c0_1, %c0_2] : memref<128x384xf32, #tpu.memory_space<vmem>>, vector<128x384xf32>
    %cst = arith.constant dense<0.000000e+00> : vector<64x384xf32>
    %7 = tpu.matmul %5, %6, %cst {dimension_numbers = #tpu.dot_dimension_numbers<[1], [0], [0], [1], [0, 0, 1, 1], [], []>} : vector<64x128xf32>, vector<128x384xf32>, vector<64x384xf32> -> vector<64x384xf32>
    %c0_3 = arith.constant 0 : index
    %c0_4 = arith.constant 0 : index
    %8 = vector.load %arg8[%c0_3, %c0_4] : memref<64x384xf32, #tpu.memory_space<vmem>>, vector<64x384xf32>
    tpu.vector_store %arg8[%c0_3, %c0_4], %7 {strides = array<i32>} : memref<64x384xf32, #tpu.memory_space<vmem>>, vector<64x384xf32>,
    %c0_5 = arith.constant 0 : index
    %c0_6 = arith.constant 0 : index
    %9 = vector.load %arg4[%c0_5, %c0_6] : memref<1x384xf32, #tpu.memory_space<vmem>>, vector<1x384xf32>
    %cst_7 = arith.constant 0.000000e+00 : f32
    %10 = vector.broadcast %cst_7 : f32 to vector<8x128xf32>
    %c0_8 = arith.constant 0 : index
    %c0_9 = arith.constant 0 : index
    %11 = vector.load %arg8[%c0_8, %c0_9] : memref<64x384xf32, #tpu.memory_space<vmem>>, vector<8x384xf32>
    %12 = arith.truncf %10 : vector<8x128xf32> to vector<8x128xbf16>
    %c0_10 = arith.constant 0 : index
    %c0_11 = arith.constant 0 : index
    %13 = vector.load %arg3[%c0_10, %c0_11] : memref<128x384xbf16, #tpu.memory_space<vmem>>, vector<128x384xbf16>
    %cst_12 = arith.constant dense<0.000000e+00> : vector<8x384xf32>
    %14 = tpu.matmul %12, %13, %cst_12 {dimension_numbers = #tpu.dot_dimension_numbers<[1], [0], [0], [1], [0, 0, 1, 1], [], []>} : vector<8x128xbf16>, vector<128x384xbf16>, vector<8x384xf32> -> vector<8x384xf32>
    %15 = vector.broadcast %9 : vector<1x384xf32> to vector<8x384xf32>
    %16 = arith.addf %14, %15 : vector<8x384xf32>
    %17 = vector.extract_strided_slice %11 {offsets = [0, 0], sizes = [8, 256], strides = [1, 1]} : vector<8x384xf32> to vector<8x256xf32>
    %18 = vector.extract_strided_slice %16 {offsets = [0, 0], sizes = [8, 256], strides = [1, 1]} : vector<8x384xf32> to vector<8x256xf32>
    %19 = arith.addf %17, %18 : vector<8x256xf32>
    %20 = arith.negf %19 : vector<8x256xf32>
    %21 = math.exp %20 : vector<8x256xf32>
    %cst_13 = arith.constant 1.000000e+00 : f32
    %22 = vector.broadcast %cst_13 : f32 to vector<8x256xf32>
    %23 = arith.addf %22, %21 : vector<8x256xf32>
    %24 = arith.divf %22, %23 : vector<8x256xf32>
    %25 = vector.extract_strided_slice %24 {offsets = [0, 0], sizes = [8, 128], strides = [1, 1]} : vector<8x256xf32> to vector<8x128xf32>
    %26 = vector.extract_strided_slice %24 {offsets = [0, 128], sizes = [8, 128], strides = [1, 1]} : vector<8x256xf32> to vector<8x128xf32>
    %27 = vector.extract_strided_slice %11 {offsets = [0, 256], sizes = [8, 128], strides = [1, 1]} : vector<8x384xf32> to vector<8x128xf32>
    %28 = vector.extract_strided_slice %16 {offsets = [0, 256], sizes = [8, 128], strides = [1, 1]} : vector<8x384xf32> to vector<8x128xf32>
    %29 = arith.mulf %25, %28 : vector<8x128xf32>
    %30 = arith.addf %27, %29 : vector<8x128xf32>
    %31 = math.tanh %30 : vector<8x128xf32>
    %cst_14 = arith.constant 1.000000e+00 : f32
    %32 = vector.broadcast %cst_14 : f32 to vector<8x128xf32>
    %33 = arith.subf %32, %26 : vector<8x128xf32>
    %34 = arith.mulf %33, %31 : vector<8x128xf32>
    %35 = arith.mulf %26, %10 : vector<8x128xf32>
    %36 = arith.addf %34, %35 : vector<8x128xf32>
    %c8 = arith.constant 8 : index
    %c0_15 = arith.constant 0 : index
    %37 = vector.load %arg8[%c8, %c0_15] : memref<64x384xf32, #tpu.memory_space<vmem>>, vector<8x384xf32>
    %38 = arith.truncf %36 : vector<8x128xf32> to vector<8x128xbf16>
    %c0_16 = arith.constant 0 : index
    %c0_17 = arith.constant 0 : index
    %39 = vector.load %arg3[%c0_16, %c0_17] : memref<128x384xbf16, #tpu.memory_space<vmem>>, vector<128x384xbf16>
    %cst_18 = arith.constant dense<0.000000e+00> : vector<8x384xf32>
    %40 = tpu.matmul %38, %39, %cst_18 {dimension_numbers = #tpu.dot_dimension_numbers<[1], [0], [0], [1], [0, 0, 1, 1], [], []>} : vector<8x128xbf16>, vector<128x384xbf16>, vector<8x384xf32> -> vector<8x384xf32>
    %41 = vector.broadcast %9 : vector<1x384xf32> to vector<8x384xf32>
    %42 = arith.addf %40, %41 : vector<8x384xf32>
    %43 = vector.extract_strided_slice %37 {offsets = [0, 0], sizes = [8, 256], strides = [1, 1]} : vector<8x384xf32> to vector<8x256xf32>
    %44 = vector.extract_strided_slice %42 {offsets = [0, 0], sizes = [8, 256], strides = [1, 1]} : vector<8x384xf32> to vector<8x256xf32>
    %45 = arith.addf %43, %44 : vector<8x256xf32>
    %46 = arith.negf %45 : vector<8x256xf32>
    %47 = math.exp %46 : vector<8x256xf32>
    %cst_19 = arith.constant 1.000000e+00 : f32
    %48 = vector.broadcast %cst_19 : f32 to vector<8x256xf32>
    %49 = arith.addf %48, %47 : vector<8x256xf32>
    %50 = arith.divf %48, %49 : vector<8x256xf32>
    %51 = vector.extract_strided_slice %50 {offsets = [0, 0], sizes = [8, 128], strides = [1, 1]} : vector<8x256xf32> to vector<8x128xf32>
    %52 = vector.extract_strided_slice %50 {offsets = [0, 128], sizes = [8, 128], strides = [1, 1]} : vector<8x256xf32> to vector<8x128xf32>
    %53 = vector.extract_strided_slice %37 {offsets = [0, 256], sizes = [8, 128], strides = [1, 1]} : vector<8x384xf32> to vector<8x128xf32>
    %54 = vector.extract_strided_slice %42 {offsets = [0, 256], sizes = [8, 128], strides = [1, 1]} : vector<8x384xf32> to vector<8x128xf32>
    %55 = arith.mulf %51, %54 : vector<8x128xf32>
    %56 = arith.addf %53, %55 : vector<8x128xf32>
    %57 = math.tanh %56 : vector<8x128xf32>
    %cst_20 = arith.constant 1.000000e+00 : f32
    %58 = vector.broadcast %cst_20 : f32 to vector<8x128xf32>
    %59 = arith.subf %58, %52 : vector<8x128xf32>
    %60 = arith.mulf %59, %57 : vector<8x128xf32>
    %61 = arith.mulf %52, %36 : vector<8x128xf32>
    %62 = arith.addf %60, %61 : vector<8x128xf32>
    %c16 = arith.constant 16 : index
    %c0_21 = arith.constant 0 : index
    %63 = vector.load %arg8[%c16, %c0_21] : memref<64x384xf32, #tpu.memory_space<vmem>>, vector<8x384xf32>
    %64 = arith.truncf %62 : vector<8x128xf32> to vector<8x128xbf16>
    %c0_22 = arith.constant 0 : index
    %c0_23 = arith.constant 0 : index
    %65 = vector.load %arg3[%c0_22, %c0_23] : memref<128x384xbf16, #tpu.memory_space<vmem>>, vector<128x384xbf16>
    %cst_24 = arith.constant dense<0.000000e+00> : vector<8x384xf32>
    %66 = tpu.matmul %64, %65, %cst_24 {dimension_numbers = #tpu.dot_dimension_numbers<[1], [0], [0], [1], [0, 0, 1, 1], [], []>} : vector<8x128xbf16>, vector<128x384xbf16>, vector<8x384xf32> -> vector<8x384xf32>
    %67 = vector.broadcast %9 : vector<1x384xf32> to vector<8x384xf32>
    %68 = arith.addf %66, %67 : vector<8x384xf32>
    %69 = vector.extract_strided_slice %63 {offsets = [0, 0], sizes = [8, 256], strides = [1, 1]} : vector<8x384xf32> to vector<8x256xf32>
    %70 = vector.extract_strided_slice %68 {offsets = [0, 0], sizes = [8, 256], strides = [1, 1]} : vector<8x384xf32> to vector<8x256xf32>
    %71 = arith.addf %69, %70 : vector<8x256xf32>
    %72 = arith.negf %71 : vector<8x256xf32>
    %73 = math.exp %72 : vector<8x256xf32>
    %cst_25 = arith.constant 1.000000e+00 : f32
    %74 = vector.broadcast %cst_25 : f32 to vector<8x256xf32>
    %75 = arith.addf %74, %73 : vector<8x256xf32>
    %76 = arith.divf %74, %75 : vector<8x256xf32>
    %77 = vector.extract_strided_slice %76 {offsets = [0, 0], sizes = [8, 128], strides = [1, 1]} : vector<8x256xf32> to vector<8x128xf32>
    %78 = vector.extract_strided_slice %76 {offsets = [0, 128], sizes = [8, 128], strides = [1, 1]} : vector<8x256xf32> to vector<8x128xf32>
    %79 = vector.extract_strided_slice %63 {offsets = [0, 256], sizes = [8, 128], strides = [1, 1]} : vector<8x384xf32> to vector<8x128xf32>
    %80 = vector.extract_strided_slice %68 {offsets = [0, 256], sizes = [8, 128], strides = [1, 1]} : vector<8x384xf32> to vector<8x128xf32>
    %81 = arith.mulf %77, %80 : vector<8x128xf32>
    %82 = arith.addf %79, %81 : vector<8x128xf32>
    %83 = math.tanh %82 : vector<8x128xf32>
    %cst_26 = arith.constant 1.000000e+00 : f32
    %84 = vector.broadcast %cst_26 : f32 to vector<8x128xf32>
    %85 = arith.subf %84, %78 : vector<8x128xf32>
    %86 = arith.mulf %85, %83 : vector<8x128xf32>
    %87 = arith.mulf %78, %62 : vector<8x128xf32>
    %88 = arith.addf %86, %87 : vector<8x128xf32>
    %c24 = arith.constant 24 : index
    %c0_27 = arith.constant 0 : index
    %89 = vector.load %arg8[%c24, %c0_27] : memref<64x384xf32, #tpu.memory_space<vmem>>, vector<8x384xf32>
    %90 = arith.truncf %88 : vector<8x128xf32> to vector<8x128xbf16>
    %c0_28 = arith.constant 0 : index
    %c0_29 = arith.constant 0 : index
    %91 = vector.load %arg3[%c0_28, %c0_29] : memref<128x384xbf16, #tpu.memory_space<vmem>>, vector<128x384xbf16>
    %cst_30 = arith.constant dense<0.000000e+00> : vector<8x384xf32>
    %92 = tpu.matmul %90, %91, %cst_30 {dimension_numbers = #tpu.dot_dimension_numbers<[1], [0], [0], [1], [0, 0, 1, 1], [], []>} : vector<8x128xbf16>, vector<128x384xbf16>, vector<8x384xf32> -> vector<8x384xf32>
    %93 = vector.broadcast %9 : vector<1x384xf32> to vector<8x384xf32>
    %94 = arith.addf %92, %93 : vector<8x384xf32>
    %95 = vector.extract_strided_slice %89 {offsets = [0, 0], sizes = [8, 256], strides = [1, 1]} : vector<8x384xf32> to vector<8x256xf32>
    %96 = vector.extract_strided_slice %94 {offsets = [0, 0], sizes = [8, 256], strides = [1, 1]} : vector<8x384xf32> to vector<8x256xf32>
    %97 = arith.addf %95, %96 : vector<8x256xf32>
    %98 = arith.negf %97 : vector<8x256xf32>
    %99 = math.exp %98 : vector<8x256xf32>
    %cst_31 = arith.constant 1.000000e+00 : f32
    %100 = vector.broadcast %cst_31 : f32 to vector<8x256xf32>
    %101 = arith.addf %100, %99 : vector<8x256xf32>
    %102 = arith.divf %100, %101 : vector<8x256xf32>
    %103 = vector.extract_strided_slice %102 {offsets = [0, 0], sizes = [8, 128], strides = [1, 1]} : vector<8x256xf32> to vector<8x128xf32>
    %104 = vector.extract_strided_slice %102 {offsets = [0, 128], sizes = [8, 128], strides = [1, 1]} : vector<8x256xf32> to vector<8x128xf32>
    %105 = vector.extract_strided_slice %89 {offsets = [0, 256], sizes = [8, 128], strides = [1, 1]} : vector<8x384xf32> to vector<8x128xf32>
    %106 = vector.extract_strided_slice %94 {offsets = [0, 256], sizes = [8, 128], strides = [1, 1]} : vector<8x384xf32> to vector<8x128xf32>
    %107 = arith.mulf %103, %106 : vector<8x128xf32>
    %108 = arith.addf %105, %107 : vector<8x128xf32>
    %109 = math.tanh %108 : vector<8x128xf32>
    %cst_32 = arith.constant 1.000000e+00 : f32
    %110 = vector.broadcast %cst_32 : f32 to vector<8x128xf32>
    %111 = arith.subf %110, %104 : vector<8x128xf32>
    %112 = arith.mulf %111, %109 : vector<8x128xf32>
    %113 = arith.mulf %104, %88 : vector<8x128xf32>
    %114 = arith.addf %112, %113 : vector<8x128xf32>
    %c32 = arith.constant 32 : index
    %c0_33 = arith.constant 0 : index
    %115 = vector.load %arg8[%c32, %c0_33] : memref<64x384xf32, #tpu.memory_space<vmem>>, vector<8x384xf32>
    %116 = arith.truncf %114 : vector<8x128xf32> to vector<8x128xbf16>
    %c0_34 = arith.constant 0 : index
    %c0_35 = arith.constant 0 : index
    %117 = vector.load %arg3[%c0_34, %c0_35] : memref<128x384xbf16, #tpu.memory_space<vmem>>, vector<128x384xbf16>
    %cst_36 = arith.constant dense<0.000000e+00> : vector<8x384xf32>
    %118 = tpu.matmul %116, %117, %cst_36 {dimension_numbers = #tpu.dot_dimension_numbers<[1], [0], [0], [1], [0, 0, 1, 1], [], []>} : vector<8x128xbf16>, vector<128x384xbf16>, vector<8x384xf32> -> vector<8x384xf32>
    %119 = vector.broadcast %9 : vector<1x384xf32> to vector<8x384xf32>
    %120 = arith.addf %118, %119 : vector<8x384xf32>
    %121 = vector.extract_strided_slice %115 {offsets = [0, 0], sizes = [8, 256], strides = [1, 1]} : vector<8x384xf32> to vector<8x256xf32>
    %122 = vector.extract_strided_slice %120 {offsets = [0, 0], sizes = [8, 256], strides = [1, 1]} : vector<8x384xf32> to vector<8x256xf32>
    %123 = arith.addf %121, %122 : vector<8x256xf32>
    %124 = arith.negf %123 : vector<8x256xf32>
    %125 = math.exp %124 : vector<8x256xf32>
    %cst_37 = arith.constant 1.000000e+00 : f32
    %126 = vector.broadcast %cst_37 : f32 to vector<8x256xf32>
    %127 = arith.addf %126, %125 : vector<8x256xf32>
    %128 = arith.divf %126, %127 : vector<8x256xf32>
    %129 = vector.extract_strided_slice %128 {offsets = [0, 0], sizes = [8, 128], strides = [1, 1]} : vector<8x256xf32> to vector<8x128xf32>
    %130 = vector.extract_strided_slice %128 {offsets = [0, 128], sizes = [8, 128], strides = [1, 1]} : vector<8x256xf32> to vector<8x128xf32>
    %131 = vector.extract_strided_slice %115 {offsets = [0, 256], sizes = [8, 128], strides = [1, 1]} : vector<8x384xf32> to vector<8x128xf32>
    %132 = vector.extract_strided_slice %120 {offsets = [0, 256], sizes = [8, 128], strides = [1, 1]} : vector<8x384xf32> to vector<8x128xf32>
    %133 = arith.mulf %129, %132 : vector<8x128xf32>
    %134 = arith.addf %131, %133 : vector<8x128xf32>
    %135 = math.tanh %134 : vector<8x128xf32>
    %cst_38 = arith.constant 1.000000e+00 : f32
    %136 = vector.broadcast %cst_38 : f32 to vector<8x128xf32>
    %137 = arith.subf %136, %130 : vector<8x128xf32>
    %138 = arith.mulf %137, %135 : vector<8x128xf32>
    %139 = arith.mulf %130, %114 : vector<8x128xf32>
    %140 = arith.addf %138, %139 : vector<8x128xf32>
    %c40 = arith.constant 40 : index
    %c0_39 = arith.constant 0 : index
    %141 = vector.load %arg8[%c40, %c0_39] : memref<64x384xf32, #tpu.memory_space<vmem>>, vector<8x384xf32>
    %142 = arith.truncf %140 : vector<8x128xf32> to vector<8x128xbf16>
    %c0_40 = arith.constant 0 : index
    %c0_41 = arith.constant 0 : index
    %143 = vector.load %arg3[%c0_40, %c0_41] : memref<128x384xbf16, #tpu.memory_space<vmem>>, vector<128x384xbf16>
    %cst_42 = arith.constant dense<0.000000e+00> : vector<8x384xf32>
    %144 = tpu.matmul %142, %143, %cst_42 {dimension_numbers = #tpu.dot_dimension_numbers<[1], [0], [0], [1], [0, 0, 1, 1], [], []>} : vector<8x128xbf16>, vector<128x384xbf16>, vector<8x384xf32> -> vector<8x384xf32>
    %145 = vector.broadcast %9 : vector<1x384xf32> to vector<8x384xf32>
    %146 = arith.addf %144, %145 : vector<8x384xf32>
    %147 = vector.extract_strided_slice %141 {offsets = [0, 0], sizes = [8, 256], strides = [1, 1]} : vector<8x384xf32> to vector<8x256xf32>
    %148 = vector.extract_strided_slice %146 {offsets = [0, 0], sizes = [8, 256], strides = [1, 1]} : vector<8x384xf32> to vector<8x256xf32>
    %149 = arith.addf %147, %148 : vector<8x256xf32>
    %150 = arith.negf %149 : vector<8x256xf32>
    %151 = math.exp %150 : vector<8x256xf32>
    %cst_43 = arith.constant 1.000000e+00 : f32
    %152 = vector.broadcast %cst_43 : f32 to vector<8x256xf32>
    %153 = arith.addf %152, %151 : vector<8x256xf32>
    %154 = arith.divf %152, %153 : vector<8x256xf32>
    %155 = vector.extract_strided_slice %154 {offsets = [0, 0], sizes = [8, 128], strides = [1, 1]} : vector<8x256xf32> to vector<8x128xf32>
    %156 = vector.extract_strided_slice %154 {offsets = [0, 128], sizes = [8, 128], strides = [1, 1]} : vector<8x256xf32> to vector<8x128xf32>
    %157 = vector.extract_strided_slice %141 {offsets = [0, 256], sizes = [8, 128], strides = [1, 1]} : vector<8x384xf32> to vector<8x128xf32>
    %158 = vector.extract_strided_slice %146 {offsets = [0, 256], sizes = [8, 128], strides = [1, 1]} : vector<8x384xf32> to vector<8x128xf32>
    %159 = arith.mulf %155, %158 : vector<8x128xf32>
    %160 = arith.addf %157, %159 : vector<8x128xf32>
    %161 = math.tanh %160 : vector<8x128xf32>
    %cst_44 = arith.constant 1.000000e+00 : f32
    %162 = vector.broadcast %cst_44 : f32 to vector<8x128xf32>
    %163 = arith.subf %162, %156 : vector<8x128xf32>
    %164 = arith.mulf %163, %161 : vector<8x128xf32>
    %165 = arith.mulf %156, %140 : vector<8x128xf32>
    %166 = arith.addf %164, %165 : vector<8x128xf32>
    %c48 = arith.constant 48 : index
    %c0_45 = arith.constant 0 : index
    %167 = vector.load %arg8[%c48, %c0_45] : memref<64x384xf32, #tpu.memory_space<vmem>>, vector<8x384xf32>
    %168 = arith.truncf %166 : vector<8x128xf32> to vector<8x128xbf16>
    %c0_46 = arith.constant 0 : index
    %c0_47 = arith.constant 0 : index
    %169 = vector.load %arg3[%c0_46, %c0_47] : memref<128x384xbf16, #tpu.memory_space<vmem>>, vector<128x384xbf16>
    %cst_48 = arith.constant dense<0.000000e+00> : vector<8x384xf32>
    %170 = tpu.matmul %168, %169, %cst_48 {dimension_numbers = #tpu.dot_dimension_numbers<[1], [0], [0], [1], [0, 0, 1, 1], [], []>} : vector<8x128xbf16>, vector<128x384xbf16>, vector<8x384xf32> -> vector<8x384xf32>
    %171 = vector.broadcast %9 : vector<1x384xf32> to vector<8x384xf32>
    %172 = arith.addf %170, %171 : vector<8x384xf32>
    %173 = vector.extract_strided_slice %167 {offsets = [0, 0], sizes = [8, 256], strides = [1, 1]} : vector<8x384xf32> to vector<8x256xf32>
    %174 = vector.extract_strided_slice %172 {offsets = [0, 0], sizes = [8, 256], strides = [1, 1]} : vector<8x384xf32> to vector<8x256xf32>
    %175 = arith.addf %173, %174 : vector<8x256xf32>
    %176 = arith.negf %175 : vector<8x256xf32>
    %177 = math.exp %176 : vector<8x256xf32>
    %cst_49 = arith.constant 1.000000e+00 : f32
    %178 = vector.broadcast %cst_49 : f32 to vector<8x256xf32>
    %179 = arith.addf %178, %177 : vector<8x256xf32>
    %180 = arith.divf %178, %179 : vector<8x256xf32>
    %181 = vector.extract_strided_slice %180 {offsets = [0, 0], sizes = [8, 128], strides = [1, 1]} : vector<8x256xf32> to vector<8x128xf32>
    %182 = vector.extract_strided_slice %180 {offsets = [0, 128], sizes = [8, 128], strides = [1, 1]} : vector<8x256xf32> to vector<8x128xf32>
    %183 = vector.extract_strided_slice %167 {offsets = [0, 256], sizes = [8, 128], strides = [1, 1]} : vector<8x384xf32> to vector<8x128xf32>
    %184 = vector.extract_strided_slice %172 {offsets = [0, 256], sizes = [8, 128], strides = [1, 1]} : vector<8x384xf32> to vector<8x128xf32>
    %185 = arith.mulf %181, %184 : vector<8x128xf32>
    %186 = arith.addf %183, %185 : vector<8x128xf32>
    %187 = math.tanh %186 : vector<8x128xf32>
    %cst_50 = arith.constant 1.000000e+00 : f32
    %188 = vector.broadcast %cst_50 : f32 to vector<8x128xf32>
    %189 = arith.subf %188, %182 : vector<8x128xf32>
    %190 = arith.mulf %189, %187 : vector<8x128xf32>
    %191 = arith.mulf %182, %166 : vector<8x128xf32>
    %192 = arith.addf %190, %191 : vector<8x128xf32>
    %c56 = arith.constant 56 : index
    %c0_51 = arith.constant 0 : index
    %193 = vector.load %arg8[%c56, %c0_51] : memref<64x384xf32, #tpu.memory_space<vmem>>, vector<8x384xf32>
    %194 = arith.truncf %192 : vector<8x128xf32> to vector<8x128xbf16>
    %c0_52 = arith.constant 0 : index
    %c0_53 = arith.constant 0 : index
    %195 = vector.load %arg3[%c0_52, %c0_53] : memref<128x384xbf16, #tpu.memory_space<vmem>>, vector<128x384xbf16>
    %cst_54 = arith.constant dense<0.000000e+00> : vector<8x384xf32>
    %196 = tpu.matmul %194, %195, %cst_54 {dimension_numbers = #tpu.dot_dimension_numbers<[1], [0], [0], [1], [0, 0, 1, 1], [], []>} : vector<8x128xbf16>, vector<128x384xbf16>, vector<8x384xf32> -> vector<8x384xf32>
    %197 = vector.broadcast %9 : vector<1x384xf32> to vector<8x384xf32>
    %198 = arith.addf %196, %197 : vector<8x384xf32>
    %199 = vector.extract_strided_slice %193 {offsets = [0, 0], sizes = [8, 256], strides = [1, 1]} : vector<8x384xf32> to vector<8x256xf32>
    %200 = vector.extract_strided_slice %198 {offsets = [0, 0], sizes = [8, 256], strides = [1, 1]} : vector<8x384xf32> to vector<8x256xf32>
    %201 = arith.addf %199, %200 : vector<8x256xf32>
    %202 = arith.negf %201 : vector<8x256xf32>
    %203 = math.exp %202 : vector<8x256xf32>
    %cst_55 = arith.constant 1.000000e+00 : f32
    %204 = vector.broadcast %cst_55 : f32 to vector<8x256xf32>
    %205 = arith.addf %204, %203 : vector<8x256xf32>
    %206 = arith.divf %204, %205 : vector<8x256xf32>
    %207 = vector.extract_strided_slice %206 {offsets = [0, 0], sizes = [8, 128], strides = [1, 1]} : vector<8x256xf32> to vector<8x128xf32>
    %208 = vector.extract_strided_slice %206 {offsets = [0, 128], sizes = [8, 128], strides = [1, 1]} : vector<8x256xf32> to vector<8x128xf32>
    %209 = vector.extract_strided_slice %193 {offsets = [0, 256], sizes = [8, 128], strides = [1, 1]} : vector<8x384xf32> to vector<8x128xf32>
    %210 = vector.extract_strided_slice %198 {offsets = [0, 256], sizes = [8, 128], strides = [1, 1]} : vector<8x384xf32> to vector<8x128xf32>
    %211 = arith.mulf %207, %210 : vector<8x128xf32>
    %212 = arith.addf %209, %211 : vector<8x128xf32>
    %213 = math.tanh %212 : vector<8x128xf32>
    %cst_56 = arith.constant 1.000000e+00 : f32
    %214 = vector.broadcast %cst_56 : f32 to vector<8x128xf32>
    %215 = arith.subf %214, %208 : vector<8x128xf32>
    %216 = arith.mulf %215, %213 : vector<8x128xf32>
    %217 = arith.mulf %208, %192 : vector<8x128xf32>
    %218 = arith.addf %216, %217 : vector<8x128xf32>
    %219 = arith.truncf %218 : vector<8x128xf32> to vector<8x128xbf16>
    %c0_57 = arith.constant 0 : index
    %c0_58 = arith.constant 0 : index
    %c0_59 = arith.constant 0 : index
    %220 = vector.load %arg5[%c0_57, %c0_58, %c0_59] : memref<6x128x128xbf16, #tpu.memory_space<vmem>>, vector<1x128x128xbf16>
    %221 = vector.shape_cast %220 : vector<1x128x128xbf16> to vector<128x128xbf16>
    %cst_60 = arith.constant dense<0.000000e+00> : vector<8x128xf32>
    %222 = tpu.matmul %219, %221, %cst_60 {dimension_numbers = #tpu.dot_dimension_numbers<[1], [0], [0], [1], [0, 0, 1, 1], [], []>} : vector<8x128xbf16>, vector<128x128xbf16>, vector<8x128xf32> -> vector<8x128xf32>
    %c0_61 = arith.constant 0 : index
    %c0_62 = arith.constant 0 : index
    %223 = vector.load %arg6[%c0_61, %c0_62] : memref<6x128xf32, #tpu.memory_space<vmem>>, vector<1x128xf32>
    %224 = vector.broadcast %223 : vector<1x128xf32> to vector<8x128xf32>
    %225 = arith.addf %222, %224 : vector<8x128xf32>
    %226 = arith.truncf %225 : vector<8x128xf32> to vector<8x128xbf16>
    %c1 = arith.constant 1 : index
    %c0_63 = arith.constant 0 : index
    %c0_64 = arith.constant 0 : index
    %227 = vector.load %arg5[%c1, %c0_63, %c0_64] : memref<6x128x128xbf16, #tpu.memory_space<vmem>>, vector<1x128x128xbf16>
    %228 = vector.shape_cast %227 : vector<1x128x128xbf16> to vector<128x128xbf16>
    %cst_65 = arith.constant dense<0.000000e+00> : vector<8x128xf32>
    %229 = tpu.matmul %226, %228, %cst_65 {dimension_numbers = #tpu.dot_dimension_numbers<[1], [0], [0], [1], [0, 0, 1, 1], [], []>} : vector<8x128xbf16>, vector<128x128xbf16>, vector<8x128xf32> -> vector<8x128xf32>
    %c1_66 = arith.constant 1 : index
    %c0_67 = arith.constant 0 : index
    %230 = vector.load %arg6[%c1_66, %c0_67] : memref<6x128xf32, #tpu.memory_space<vmem>>, vector<1x128xf32>
    %231 = vector.broadcast %230 : vector<1x128xf32> to vector<8x128xf32>
    %232 = arith.addf %229, %231 : vector<8x128xf32>
    %cst_68 = arith.constant 0.000000e+00 : f32
    %233 = vector.broadcast %cst_68 : f32 to vector<8x128xf32>
    %234 = arith.maximumf %232, %233 : vector<8x128xf32>
    %235 = arith.truncf %234 : vector<8x128xf32> to vector<8x128xbf16>
    %c2 = arith.constant 2 : index
    %c0_69 = arith.constant 0 : index
    %c0_70 = arith.constant 0 : index
    %236 = vector.load %arg5[%c2, %c0_69, %c0_70] : memref<6x128x128xbf16, #tpu.memory_space<vmem>>, vector<1x128x128xbf16>
    %237 = vector.shape_cast %236 : vector<1x128x128xbf16> to vector<128x128xbf16>
    %cst_71 = arith.constant dense<0.000000e+00> : vector<8x128xf32>
    %238 = tpu.matmul %235, %237, %cst_71 {dimension_numbers = #tpu.dot_dimension_numbers<[1], [0], [0], [1], [0, 0, 1, 1], [], []>} : vector<8x128xbf16>, vector<128x128xbf16>, vector<8x128xf32> -> vector<8x128xf32>
    %c2_72 = arith.constant 2 : index
    %c0_73 = arith.constant 0 : index
    %239 = vector.load %arg6[%c2_72, %c0_73] : memref<6x128xf32, #tpu.memory_space<vmem>>, vector<1x128xf32>
    %240 = vector.broadcast %239 : vector<1x128xf32> to vector<8x128xf32>
    %241 = arith.addf %238, %240 : vector<8x128xf32>
    %cst_74 = arith.constant 0.000000e+00 : f32
    %242 = vector.broadcast %cst_74 : f32 to vector<8x128xf32>
    %243 = arith.maximumf %241, %242 : vector<8x128xf32>
    %244 = arith.truncf %243 : vector<8x128xf32> to vector<8x128xbf16>
    %c3 = arith.constant 3 : index
    %c0_75 = arith.constant 0 : index
    %c0_76 = arith.constant 0 : index
    %245 = vector.load %arg5[%c3, %c0_75, %c0_76] : memref<6x128x128xbf16, #tpu.memory_space<vmem>>, vector<1x128x128xbf16>
    %246 = vector.shape_cast %245 : vector<1x128x128xbf16> to vector<128x128xbf16>
    %cst_77 = arith.constant dense<0.000000e+00> : vector<8x128xf32>
    %247 = tpu.matmul %244, %246, %cst_77 {dimension_numbers = #tpu.dot_dimension_numbers<[1], [0], [0], [1], [0, 0, 1, 1], [], []>} : vector<8x128xbf16>, vector<128x128xbf16>, vector<8x128xf32> -> vector<8x128xf32>
    %c3_78 = arith.constant 3 : index
    %c0_79 = arith.constant 0 : index
    %248 = vector.load %arg6[%c3_78, %c0_79] : memref<6x128xf32, #tpu.memory_space<vmem>>, vector<1x128xf32>
    %249 = vector.broadcast %248 : vector<1x128xf32> to vector<8x128xf32>
    %250 = arith.addf %247, %249 : vector<8x128xf32>
    %cst_80 = arith.constant 0.000000e+00 : f32
    %251 = vector.broadcast %cst_80 : f32 to vector<8x128xf32>
    %252 = arith.maximumf %250, %251 : vector<8x128xf32>
    %253 = arith.truncf %252 : vector<8x128xf32> to vector<8x128xbf16>
    %c4 = arith.constant 4 : index
    %c0_81 = arith.constant 0 : index
    %c0_82 = arith.constant 0 : index
    %254 = vector.load %arg5[%c4, %c0_81, %c0_82] : memref<6x128x128xbf16, #tpu.memory_space<vmem>>, vector<1x128x128xbf16>
    %255 = vector.shape_cast %254 : vector<1x128x128xbf16> to vector<128x128xbf16>
    %cst_83 = arith.constant dense<0.000000e+00> : vector<8x128xf32>
    %256 = tpu.matmul %253, %255, %cst_83 {dimension_numbers = #tpu.dot_dimension_numbers<[1], [0], [0], [1], [0, 0, 1, 1], [], []>} : vector<8x128xbf16>, vector<128x128xbf16>, vector<8x128xf32> -> vector<8x128xf32>
    %c4_84 = arith.constant 4 : index
    %c0_85 = arith.constant 0 : index
    %257 = vector.load %arg6[%c4_84, %c0_85] : memref<6x128xf32, #tpu.memory_space<vmem>>, vector<1x128xf32>
    %258 = vector.broadcast %257 : vector<1x128xf32> to vector<8x128xf32>
    %259 = arith.addf %256, %258 : vector<8x128xf32>
    %cst_86 = arith.constant 0.000000e+00 : f32
    %260 = vector.broadcast %cst_86 : f32 to vector<8x128xf32>
    %261 = arith.maximumf %259, %260 : vector<8x128xf32>
    %262 = arith.truncf %261 : vector<8x128xf32> to vector<8x128xbf16>
    %c5 = arith.constant 5 : index
    %c0_87 = arith.constant 0 : index
    %c0_88 = arith.constant 0 : index
    %263 = vector.load %arg5[%c5, %c0_87, %c0_88] : memref<6x128x128xbf16, #tpu.memory_space<vmem>>, vector<1x128x128xbf16>
    %264 = vector.shape_cast %263 : vector<1x128x128xbf16> to vector<128x128xbf16>
    %cst_89 = arith.constant dense<0.000000e+00> : vector<8x128xf32>
    %265 = tpu.matmul %262, %264, %cst_89 {dimension_numbers = #tpu.dot_dimension_numbers<[1], [0], [0], [1], [0, 0, 1, 1], [], []>} : vector<8x128xbf16>, vector<128x128xbf16>, vector<8x128xf32> -> vector<8x128xf32>
    %c5_90 = arith.constant 5 : index
    %c0_91 = arith.constant 0 : index
    %266 = vector.load %arg6[%c5_90, %c0_91] : memref<6x128xf32, #tpu.memory_space<vmem>>, vector<1x128xf32>
    %267 = vector.broadcast %266 : vector<1x128xf32> to vector<8x128xf32>
    %268 = arith.addf %265, %267 : vector<8x128xf32>
    %c0_92 = arith.constant 0 : index
    %c0_93 = arith.constant 0 : index
    %269 = vector.load %arg7[%c0_92, %c0_93] : memref<8x128xf32, #tpu.memory_space<vmem>>, vector<8x128xf32>
    tpu.vector_store %arg7[%c0_92, %c0_93], %268 {strides = array<i32>} : memref<8x128xf32, #tpu.memory_space<vmem>>, vector<8x128xf32>,
    return
  }
  func.func @transform_0(%arg0: i32) -> (i32, i32) {
    %c0_i32 = arith.constant 0 : i32
    %c0_i32_0 = arith.constant 0 : i32
    %c0_i32_1 = arith.constant 0 : i32
    return %c0_i32, %c0_i32_0 : i32, i32
  }
  func.func @transform_1(%arg0: i32) -> (i32, i32) {
    %c0_i32 = arith.constant 0 : i32
    %c0_i32_0 = arith.constant 0 : i32
    %c0_i32_1 = arith.constant 0 : i32
    return %c0_i32, %c0_i32_0 : i32, i32
  }
  func.func @transform_2(%arg0: i32) -> (i32, i32) {
    %c0_i32 = arith.constant 0 : i32
    %c0_i32_0 = arith.constant 0 : i32
    %c0_i32_1 = arith.constant 0 : i32
    return %c0_i32, %c0_i32_0 : i32, i32
  }
  func.func @transform_3(%arg0: i32) -> (i32, i32) {
    %c0_i32 = arith.constant 0 : i32
    %c0_i32_0 = arith.constant 0 : i32
    %c0_i32_1 = arith.constant 0 : i32
    return %c0_i32, %c0_i32_0 : i32, i32
  }
  func.func @transform_4(%arg0: i32) -> (i32, i32, i32) {
    %c0_i32 = arith.constant 0 : i32
    %c0_i32_0 = arith.constant 0 : i32
    %c0_i32_1 = arith.constant 0 : i32
    %c0_i32_2 = arith.constant 0 : i32
    return %c0_i32, %c0_i32_0, %c0_i32_1 : i32, i32, i32
  }
  func.func @transform_5(%arg0: i32) -> (i32, i32) {
    %c0_i32 = arith.constant 0 : i32
    %c0_i32_0 = arith.constant 0 : i32
    %c0_i32_1 = arith.constant 0 : i32
    return %c0_i32, %c0_i32_0 : i32, i32
  }
  func.func @transform_6(%arg0: i32) -> (i32, i32) {
    %c0_i32 = arith.constant 0 : i32
    %c0_i32_0 = arith.constant 0 : i32
    %c0_i32_1 = arith.constant 0 : i32
    return %c0_i32, %c0_i32_0 : i32, i32
  }
}

</mosaic_0001>

<bundles_post_ra>
// kernel: tpu_custom_call.1
= control target key start
LH: loop header
LB: loop body
LE: loop exit
PB: predicated region body
PF: predicated region fallthrough
CT: control target
= control target key end

     0   :  { %11 = vsyncpa [#allocation4], 0  ;;  %s3667_s0 = inlined_call_operand.vmem [shape: s32[64,1], index: 0, kind: input, shape index: {}]   ;;  %s3668_s1 = inlined_call_operand.hbm [shape: f32[128,384], index: 1, kind: input, shape index: {}]   ;;  %s3669_s2 = inlined_call_operand.hbm [shape: bf16[128,384], index: 2, kind: input, shape index: {}]   ;;  %s3670_s3 = inlined_call_operand.vmem [shape: f32[1,384], index: 3, kind: input, shape index: {}]   ;;  %s3671_s4 = inlined_call_operand.hbm [shape: bf16[6,128,128], index: 4, kind: input, shape index: {}]   ;;  %s3672_s5 = inlined_call_operand.vmem [shape: f32[6,128], index: 5, kind: input, shape index: {}]   ;;  %s3673_s6 = inlined_call_operand.hbm [shape: f32[8,128], index: 6, kind: output, shape index: {}]  }
   0x1   :  { %12 = vsyncpa [#allocation7], 0 }
   0x2   :  { %13 = vsyncpa [#allocation5], 0  ;;  %s2993_s21 = smov [#allocation6]  }
   0x3   :  { %s33_s22 = sshll.u32 %s2993_s21, 4  ;;  %s34_s22 = int_to_ptr.vmem [resolvable:$true] %s33_s22 }
   0x4   :  { %s2915_s23 = scalar_lea.vmem %s34_s22, 3072  ;;  %p2920_p1 = scmp.lt.s32.totalorder %s34_s22, %s34_s22 }
   0x5   :  { %p2916_p0 = scmp.ne.s32.totalorder %s34_s22, %s2915_s23  ;;  %p2921_p2 = scmp.lt.s32.totalorder %s2915_s23, %s2915_s23 }
   0x7   :  { %p2922_p3 = por %p2921_p2, %p2920_p1 }
   0x9   :  { %p2923_p4 = pnand %p2922_p3, %p2916_p0 }
   0xb   :  { %2926 = shalt.err (!%p2923_p4)
}
   0xc   :  { %s2994_s24 = smov 192   ;;  %s2995_s25 = smov 12  }
   0xd   :  { %39 = dma.hbm_to_vmem [thread:$0]  %s3669_s2, 3072, %s34_s22, [#allocation7], %s2994_s24, %s2994_s24, %s2995_s25  }
   0xe   :  { %s2996_s28 = smov [#allocation3]  }
   0xf   :  { %s21_s29 = sshll.u32 %s2996_s28, 4  ;;  %s22_s29 = int_to_ptr.vmem [resolvable:$true] %s21_s29 }
  0x10   :  { %s2935_s30 = scalar_lea.vmem %s22_s29, 6144  ;;  %p2940_p6 = scmp.lt.s32.totalorder %s22_s29, %s22_s29 }
  0x11   :  { %p2936_p5 = scmp.ne.s32.totalorder %s22_s29, %s2935_s30  ;;  %p2941_p7 = scmp.lt.s32.totalorder %s2935_s30, %s2935_s30 }
  0x13   :  { %p2942_p8 = por %p2941_p7, %p2940_p6 }
  0x15   :  { %p2943_p9 = pnand %p2942_p8, %p2936_p5 }
  0x17   :  { %2946 = shalt.err (!%p2943_p9)
}
  0x18   :  { %s2997_s7 = smov 384   ;;  %s2998_s8 = smov 24  }
  0x19   :  { %27 = dma.hbm_to_vmem [thread:$0]  %s3668_s1, 6144, %s22_s29, [#allocation4], %s2997_s7, %s2997_s7, %s2998_s8  }
  0x1a   :  { %s2999_s11 = smov [#allocation8]  }
  0x1b   :  { %s47_s12 = sshll.u32 %s2999_s11, 4  ;;  %s48_s12 = int_to_ptr.vmem [resolvable:$true] %s47_s12 }
  0x1c   :  { %s2955_s2 = scalar_lea.vmem %s48_s12, 6144  ;;  %p2960_p11 = scmp.lt.s32.totalorder %s48_s12, %s48_s12 }
  0x1d   :  { %p2956_p10 = scmp.ne.s32.totalorder %s48_s12, %s2955_s2  ;;  %p2961_p12 = scmp.lt.s32.totalorder %s2955_s2, %s2955_s2 }
  0x1f   :  { %p2962_p13 = por %p2961_p12, %p2960_p11 }
  0x21   :  { %p2963_p0 = pnand %p2962_p13, %p2956_p10 }
  0x23   :  { %2966 = shalt.err (!%p2963_p0)
}
  0x24   :  { %s3000_s13 = smov 64   ;;  %s3001_s14 = smov 4  }
  0x25   :  { %53 = dma.hbm_to_vmem [thread:$0]  %s3671_s4, 6144, %s48_s12, [#allocation7], %s3000_s13, %s3000_s13, %s3001_s14  }
  0x26   :  { %2987 = dma.done.wait [#allocation4], 6144  }
  0x27   :  { %2988 = vsyncadd [#allocation4], 4294961152 }
  0x28   :  { %2989 = dma.done.wait [#allocation7], 9216  }
  0x29   :  { %2990 = vsyncadd [#allocation7], 4294958080  ;;  %v3674_v0 = vmov 0   ;;  %v3676_v1 = vmov 0.0   ;;  %v68_v2 = vld [vmem:[%s3667_s0 + $0x10] sm:$0xff]  ;;  %v66_v3 = vld [vmem:[%s3667_s0] sm:$0xff]  ;;  %v74_v59 = vlaneseq }
  0x2a   :  { %2731 = vset.pattern.permute.xlu1 %v3674_v0  ;;  %2730 = vset.pattern.permute.xlu0 %v3674_v0  ;;  %v69_v4 = vld [vmem:[%s3667_s0 + $0x18] sm:$0xff]  ;;  %v67_v5 = vld [vmem:[%s3667_s0 + $0x8] sm:$0xff]  ;;  %v170_v6 = vld [vmem:[#allocation3 + $0x170] sm:$0xff]  ;;  %vm3005_vm8 = vmmov 0   ;;  %s3006_s17 = smov [#allocation9]  }
  0x2b   :  { %236 = vmatprep.mubr.f32.mxu0 %v3676_v1  ;;  %83 = vperm.xlu1 %2731, %v68_v2   ;;  %v169_v7 = vld [vmem:[#allocation3 + $0x168] sm:$0xff]  ;;  %v167_v8 = vld [vmem:[#allocation3 + $0x158] sm:$0xff]  ;;  %v166_v9 = vld [vmem:[#allocation3 + $0x150] sm:$0xff]  ;;  %v3083_v60 = vand.u32 127, %v74_v59  ;;  %s2114_s18 = sshll.u32 %s3006_s17, 4  ;;  %s2115_s18 = int_to_ptr.vmem [resolvable:$true] %s2114_s18 }
  0x2c   :  { %77 = vperm.xlu0 %2730, %v66_v3   ;;  %172 = vmatprep.subr.mxu0 %v170_v6  ;;  %v171_v10 = vld [vmem:[#allocation3 + $0x178] sm:$0xff]  ;;  %v164_v11 = vld [vmem:[#allocation3 + $0x140] sm:$0xff]  ;;  %v71_v13 = vld [vmem:[%s3667_s0 + $0x28] sm:$0xff]  ;;  %v3004_v3 = vmov 1.0   ;;  %s2967_s19 = scalar_lea.vmem %s2115_s18, 128  ;;  %p2972_p2 = scmp.lt.s32.totalorder %s2115_s18, %s2115_s18 }
  0x2d   :  { %173 = vmatpush1.msra.mxu0 %v169_v7  ;;  %v168_v12 = vld [vmem:[#allocation3 + $0x160] sm:$0xff]  ;;  %2392 = vmatprep.subr.mxu1 %v171_v10  ;;  %v163_v15 = vld [vmem:[#allocation3 + $0x138] sm:$0xff]  ;;  %v161_v16 = vld [vmem:[#allocation3 + $0x128] sm:$0xff]  ;;  %p2968_p1 = scmp.ne.s32.totalorder %s2115_s18, %s2967_s19  ;;  %p2973_p3 = scmp.lt.s32.totalorder %s2967_s19, %s2967_s19 }
  0x2e   :  { %v70_v14 = vld [vmem:[%s3667_s0 + $0x20] sm:$0xff]  ;;  %174 = vmatprep.subr.mxu0 %v167_v8  ;;  %2393 = vmatpush3.msra.mxu1 %v171_v10  ;;  %v165_v17 = vld [vmem:[#allocation3 + $0x148] sm:$0xff]  ;;  %v73_v19 = vld [vmem:[%s3667_s0 + $0x38] sm:$0xff] }
  0x2f   :  { %86 = vperm.xlu1 %2731, %v69_v4   ;;  %175 = vmatpush1.msra.mxu0 %v166_v9  ;;  %v160_v18 = vld [vmem:[#allocation3 + $0x120] sm:$0xff]  ;;  %v72_v20 = vld [vmem:[%s3667_s0 + $0x30] sm:$0xff]  ;;  %v157_v23 = vld [vmem:[#allocation3 + $0x108] sm:$0xff]  ;;  %p2974_p4 = por %p2973_p3, %p2972_p2 }
  0x30   :  { %80 = vperm.xlu0 %2730, %v67_v5   ;;  %176 = vmatprep.subr.mxu0 %v164_v11  ;;  %v158_v21 = vld [vmem:[#allocation3 + $0x110] sm:$0xff]  ;;  %v155_v24 = vld [vmem:[#allocation3 + $0xf8] sm:$0xff]  ;;  %v152_v27 = vld [vmem:[#allocation3 + $0xe0] sm:$0xff] }
  0x31   :  { %2394 = vmatprep.subr.mxu1 %v168_v12  ;;  %177 = vmatpush1.msra.mxu0 %v163_v15  ;;  %v162_v22 = vld [vmem:[#allocation3 + $0x130] sm:$0xff]  ;;  %v159_v25 = vld [vmem:[#allocation3 + $0x118] sm:$0xff]  ;;  %v156_v28 = vld [vmem:[#allocation3 + $0x100] sm:$0xff]  ;;  %p2975_p5 = pnand %p2974_p4, %p2968_p1 }
  0x32   :  { %2395 = vmatpush3.msra.mxu1 %v168_v12  ;;  %178 = vmatprep.subr.mxu0 %v161_v16  ;;  %v154_v26 = vld [vmem:[#allocation3 + $0xf0] sm:$0xff]  ;;  %v151_v29 = vld [vmem:[#allocation3 + $0xd8] sm:$0xff]  ;;  %v149_v30 = vld [vmem:[#allocation3 + $0xc8] sm:$0xff] }
  0x33   :  { %92 = vperm.xlu1 %2731, %v71_v13   ;;  %2396 = vmatprep.subr.mxu1 %v165_v17  ;;  %v148_v31 = vld [vmem:[#allocation3 + $0xc0] sm:$0xff]  ;;  %v153_v32 = vld [vmem:[#allocation3 + $0xe8] sm:$0xff]  ;;  %v146_v33 = vld [vmem:[#allocation3 + $0xb0] sm:$0xff] }
  0x34   :  { %89 = vperm.xlu0 %2730, %v70_v14   ;;  %179 = vmatpush1.msra.mxu0 %v160_v18  ;;  %v145_v34 = vld [vmem:[#allocation3 + $0xa8] sm:$0xff]  ;;  %v143_v35 = vld [vmem:[#allocation3 + $0x98] sm:$0xff]  ;;  %v150_v36 = vld [vmem:[#allocation3 + $0xd0] sm:$0xff] }
  0x35   :  { %2397 = vmatpush3.msra.mxu1 %v165_v17  ;;  %180 = vmatprep.subr.mxu0 %v158_v21  ;;  %v142_v37 = vld [vmem:[#allocation3 + $0x90] sm:$0xff]  ;;  %v147_v38 = vld [vmem:[#allocation3 + $0xb8] sm:$0xff]  ;;  %v140_v39 = vld [vmem:[#allocation3 + $0x80] sm:$0xff] }
  0x36   :  { %2398 = vmatprep.subr.mxu1 %v162_v22  ;;  %181 = vmatpush1.msra.mxu0 %v157_v23  ;;  %v139_v40 = vld [vmem:[#allocation3 + $0x78] sm:$0xff]  ;;  %v137_v41 = vld [vmem:[#allocation3 + $0x68] sm:$0xff]  ;;  %v144_v42 = vld [vmem:[#allocation3 + $0xa0] sm:$0xff] }
  0x37   :  { %98 = vperm.xlu1 %2731, %v73_v19   ;;  %2399 = vmatpush3.msra.mxu1 %v162_v22  ;;  %v136_v43 = vld [vmem:[#allocation3 + $0x60] sm:$0xff]  ;;  %v141_v44 = vld [vmem:[#allocation3 + $0x88] sm:$0xff]  ;;  %v134_v45 = vld [vmem:[#allocation3 + $0x50] sm:$0xff] }
  0x38   :  { %95 = vperm.xlu0 %2730, %v72_v20   ;;  %182 = vmatprep.subr.mxu0 %v155_v24  ;;  %v133_v46 = vld [vmem:[#allocation3 + $0x48] sm:$0xff]  ;;  %v131_v47 = vld [vmem:[#allocation3 + $0x38] sm:$0xff]  ;;  %v138_v48 = vld [vmem:[#allocation3 + $0x70] sm:$0xff] }
  0x39   :  { %2400 = vmatprep.subr.mxu1 %v159_v25  ;;  %183 = vmatpush1.msra.mxu0 %v154_v26  ;;  %v130_v49 = vld [vmem:[#allocation3 + $0x30] sm:$0xff]  ;;  %v128_v50 = vld [vmem:[#allocation3 + $0x20] sm:$0xff]  ;;  %v135_v51 = vld [vmem:[#allocation3 + $0x58] sm:$0xff] }
  0x3a   :  { %2401 = vmatpush3.msra.mxu1 %v159_v25  ;;  %184 = vmatprep.subr.mxu0 %v152_v27  ;;  %v127_v52 = vld [vmem:[#allocation3 + $0x18] sm:$0xff]  ;;  %v125_v53 = vld [vmem:[#allocation3 + $0x8] sm:$0xff]  ;;  %v132_v54 = vld [vmem:[#allocation3 + $0x40] sm:$0xff] }
  0x3b   :  { %2402 = vmatprep.subr.mxu1 %v156_v28  ;;  %185 = vmatpush1.msra.mxu0 %v151_v29  ;;  %v124_v55 = vld [vmem:[#allocation3] sm:$0xff]  ;;  %v129_v56 = vld [vmem:[#allocation3 + $0x28] sm:$0xff]  ;;  %v126_v58 = vld [vmem:[#allocation3 + $0x10] sm:$0xff] }
  0x3c   :  { %2403 = vmatpush3.msra.mxu1 %v156_v28  ;;  %186 = vmatprep.subr.mxu0 %v149_v30  ;;  %v3078_v57 = vld [vmem:[#allocation6 + $0xac] ss:$12 sps:$4 sm:$0xff]   ;;  %v3085_v61 = vld [vmem:[#allocation6 + $0xa8] ss:$12 sps:$4 sm:$0xff]   ;;  %v3094_v4 = vld [vmem:[#allocation6 + $0x90] ss:$12 sps:$4 sm:$0xff]  }
  0x3d   :  { %2404 = vmatprep.subr.mxu1 %v153_v32  ;;  %187 = vmatpush1.msra.mxu0 %v148_v31  ;;  %v3087_v2 = vld [vmem:[#allocation6 + $0x94] ss:$12 sps:$4 sm:$0xff]   ;;  %v3097_v7 = vld [vmem:[#allocation6 + $0x7c] ss:$12 sps:$4 sm:$0xff]   ;;  %v3108_v9 = vld [vmem:[#allocation6 + $0x78] ss:$12 sps:$4 sm:$0xff]  }
  0x3e   :  { %2405 = vmatpush3.msra.mxu1 %v153_v32  ;;  %188 = vmatprep.subr.mxu0 %v146_v33  ;;  %v3101_v8 = vld [vmem:[#allocation6 + $0xb0] ss:$12 sps:$4 sm:$0xff]   ;;  %v3128_v13 = vld [vmem:[#allocation6 + $0x60] ss:$12 sps:$4 sm:$0xff]   ;;  %v3137_v16 = vld [vmem:[#allocation6 + $0x98] ss:$12 sps:$4 sm:$0xff]  }
  0x3f   :  { %2406 = vmatprep.subr.mxu1 %v150_v36  ;;  %189 = vmatpush1.msra.mxu0 %v145_v34  ;;  %v3114_v12 = vld [vmem:[#allocation6 + $0x64] ss:$12 sps:$4 sm:$0xff]   ;;  %v3132_v15 = vld [vmem:[#allocation6 + $0x4c] ss:$12 sps:$4 sm:$0xff]   ;;  %v3149_v18 = vld [vmem:[#allocation6 + $0x48] ss:$12 sps:$4 sm:$0xff]  }
  0x40   :  { %2407 = vmatpush3.msra.mxu1 %v150_v36  ;;  %190 = vmatprep.subr.mxu0 %v143_v35  ;;  %v3153_v19 = vld [vmem:[#allocation6 + $0x34] ss:$12 sps:$4 sm:$0xff]   ;;  %v3167_v21 = vld [vmem:[#allocation6 + $0x30] ss:$12 sps:$4 sm:$0xff]   ;;  %v3184_v24 = vld [vmem:[#allocation6 + $0x18] ss:$12 sps:$4 sm:$0xff]  }
  0x41   :  { %2408 = vmatprep.subr.mxu1 %v147_v38  ;;  %191 = vmatpush1.msra.mxu0 %v142_v37  ;;  %v3157_v20 = vld [vmem:[#allocation6 + $0x80] ss:$12 sps:$4 sm:$0xff]   ;;  %v3170_v22 = vld [vmem:[#allocation6 + $0x1c] ss:$12 sps:$4 sm:$0xff]   ;;  %v3187_v25 = vld [vmem:[#allocation6 + $0x4] ss:$12 sps:$4 sm:$0xff]  }
  0x42   :  { %2409 = vmatpush3.msra.mxu1 %v147_v38  ;;  %192 = vmatprep.subr.mxu0 %v140_v39  ;;  %v3174_v23 = vld [vmem:[#allocation6 + $0x68] ss:$12 sps:$4 sm:$0xff]   ;;  %v3190_v26 = vld [vmem:[#allocation6 + $0x50] ss:$12 sps:$4 sm:$0xff]   ;;  %v3198_v27 = vld [vmem:[#allocation6] ss:$12 sps:$4 sm:$0xff]  }
  0x43   :  { %2410 = vmatprep.subr.mxu1 %v144_v42  ;;  %193 = vmatpush1.msra.mxu0 %v139_v40  ;;  %v3202_v28 = vld [vmem:[#allocation6 + $0x38] ss:$12 sps:$4 sm:$0xff]   ;;  %v3212_v29 = vld [vmem:[#allocation6 + $0x20] ss:$12 sps:$4 sm:$0xff]   ;;  %v3220_v30 = vld [vmem:[#allocation6 + $0x8] ss:$12 sps:$4 sm:$0xff]  }
  0x44   :  { %2411 = vmatpush3.msra.mxu1 %v144_v42  ;;  %194 = vmatprep.subr.mxu0 %v137_v41 }
  0x45   :  { %2412 = vmatprep.subr.mxu1 %v141_v44  ;;  %195 = vmatpush1.msra.mxu0 %v136_v43 }
  0x46   :  { %2413 = vmatpush3.msra.mxu1 %v141_v44  ;;  %196 = vmatprep.subr.mxu0 %v134_v45  ;;  %v452_v45 = vshrl.u32 %v74_v59, 7 }
  0x47   :  { %2414 = vmatprep.subr.mxu1 %v138_v48  ;;  %197 = vmatpush1.msra.mxu0 %v133_v46 }
  0x48   :  { %2415 = vmatpush3.msra.mxu1 %v138_v48  ;;  %198 = vmatprep.subr.mxu0 %v131_v47 }
  0x49   :  { %2416 = vmatprep.subr.mxu1 %v135_v51  ;;  %199 = vmatpush1.msra.mxu0 %v130_v49  ;;  %v453_v49 = vsub.s32 0, %v452_v45 }
  0x4a   :  { %2417 = vmatpush3.msra.mxu1 %v135_v51  ;;  %200 = vmatprep.subr.mxu0 %v128_v50  ;;  %v414_v51 = vld [vmem:[%s3670_s3] sm:$0x7] }
  0x4b   :  { %2418 = vmatprep.subr.mxu1 %v132_v54  ;;  %201 = vmatpush1.msra.mxu0 %v127_v52 }
  0x4c   :  { %2419 = vmatpush3.msra.mxu1 %v132_v54  ;;  %202 = vmatprep.subr.mxu0 %v125_v53  ;;  %v3296_v54 = vrot.slane %v414_v51, %v453_v49 }
  0x4d   :  { %2420 = vmatprep.subr.mxu1 %v129_v56  ;;  %203 = vmatpush1.msra.mxu0 %v124_v55  ;;  %v457_v55 = vsub.s32 1, %v452_v45 }
  0x4e   :  { %2421 = vmatpush3.msra.mxu1 %v129_v56  ;;  %594 = vmatprep.subr.bf16.mxu0 %v3078_v57 }
  0x4f   :  { %2422 = vmatprep.subr.mxu1 %v126_v58 }
  0x50   :  { %2423 = vmatpush3.msra.mxu1 %v126_v58 }
  0x51   :  { %2436 = vmatprep.subr.bf16.mxu1 %v3676_v1 }
  0xa6   :  { %v84_v62 = vpop.permute.xlu1 %83 }
  0xa7   :  { %v78_v63 = vpop.permute.xlu0 %77  ;;  %vm102_vm1 = vcmp.eq.s32.totalorder %v3083_v60, %v84_v62  ;;  %v3303_v62 = vrot.slane %v414_v51, %v457_v55 }
  0xa8   :  { %vm100_vm0 = vcmp.eq.s32.totalorder %v3083_v60, %v78_v63 }
  0xa9   :  { %2132 = vmatmul.mubr.msk.f32.vlgmr.msra.gmra.mxu0 %vm100_vm0, %v3004_v3  ;;  %2424 = vmatprep.mubr.msk.f32.mxu1 %vm100_vm0, %v3004_v3 }
  0xaa   :  { %595 = vmatpush1.bf16.msra.mxu0 %v3085_v61  ;;  %242 = vmatprep.mubr.f32.mxu0 %v3676_v1  ;;  %v87_v5 = vpop.permute.xlu1 %86 }
  0xab   :  { %v81_v6 = vpop.permute.xlu0 %80  ;;  %596 = vmatprep.subr.bf16.mxu0 %v3087_v2  ;;  %vm103_vm3 = vcmp.eq.s32.totalorder %v3083_v60, %v87_v5 }
  0xac   :  { %vm101_vm2 = vcmp.eq.s32.totalorder %v3083_v60, %v81_v6 }
  0xad   :  { %2133 = vmatmul.mubr.msk.f32.gmra.mxu0 %vm101_vm2, %v3004_v3  ;;  %2425 = vmatmul.mubr.msk.f32.vlgmr.msra.gmra.mxu1 %vm101_vm2, %v3004_v3 }
  0xae   :  { %597 = vmatpush1.bf16.msra.mxu0 %v3094_v4  ;;  %248 = vmatprep.mubr.f32.mxu0 %v3676_v1  ;;  %v93_v10 = vpop.permute.xlu1 %92 }
  0xaf   :  { %v90_v11 = vpop.permute.xlu0 %89  ;;  %2427 = vmatprep.mubr.msk.f32.mxu1 %vm102_vm1, %v3004_v3  ;;  %598 = vmatprep.subr.bf16.mxu0 %v3097_v7  ;;  %vm105_vm5 = vcmp.eq.s32.totalorder %v3083_v60, %v93_v10 }
  0xb0   :  { %vm104_vm4 = vcmp.eq.s32.totalorder %v3083_v60, %v90_v11  ;;  %2437 = vmatpush3.bf16.msra.mxu1 %v3101_v8 }
  0xb1   :  { %2134 = vmatmul.mubr.msk.f32.gmra.mxu0 %vm102_vm1, %v3004_v3  ;;  %2428 = vmatmul.mubr.msk.f32.gmra.mxu1 %vm103_vm3, %v3004_v3 }
  0xb2   :  { %599 = vmatpush1.bf16.msra.mxu0 %v3108_v9  ;;  %2430 = vmatprep.mubr.msk.f32.mxu1 %vm104_vm4, %v3004_v3  ;;  %v99_v17 = vpop.permute.xlu1 %98 }
  0xb3   :  { %v96_v14 = vpop.permute.xlu0 %95  ;;  %254 = vmatprep.mubr.f32.mxu0 %v3676_v1  ;;  %600 = vmatprep.subr.bf16.mxu0 %v3114_v12  ;;  %vm107_vm7 = vcmp.eq.s32.totalorder %v3083_v60, %v99_v17 }
  0xb4   :  { %vm106_vm6 = vcmp.eq.s32.totalorder %v3083_v60, %v96_v14  ;;  %2438 = vmatprep.subr.bf16.mxu1 %v3676_v1 }
  0xb5   :  { %2135 = vmatmul.mubr.msk.f32.gmra.mxu0 %vm103_vm3, %v3004_v3  ;;  %2431 = vmatmul.mubr.msk.f32.gmra.mxu1 %vm105_vm5, %v3004_v3 }
  0xb6   :  { %601 = vmatpush1.bf16.msra.mxu0 %v3128_v13  ;;  %2433 = vmatprep.mubr.msk.f32.mxu1 %vm106_vm6, %v3004_v3 }
  0xb7   :  { %260 = vmatprep.mubr.f32.mxu0 %v3676_v1  ;;  %602 = vmatprep.subr.bf16.mxu0 %v3132_v15 }
  0xb8   :  { %2439 = vmatpush3.bf16.msra.mxu1 %v3137_v16 }
  0xb9   :  { %2136 = vmatmul.mubr.msk.f32.gmra.mxu0 %vm104_vm4, %v3004_v3  ;;  %2434 = vmatmul.mubr.msk.f32.gmra.mxu1 %vm107_vm7, %v3004_v3 }
  0xba   :  { %603 = vmatpush1.bf16.msra.mxu0 %v3149_v18  ;;  %266 = vmatprep.mubr.f32.mxu0 %v3676_v1 }
  0xbb   :  { %604 = vmatprep.subr.bf16.mxu0 %v3153_v19  ;;  %2440 = vmatprep.subr.bf16.mxu1 %v3676_v1 }
  0xbc   :  { %2441 = vmatpush3.bf16.msra.mxu1 %v3157_v20  ;;  %2452 = vmatprep.mubr.msk.bf16.mxu1 %vm3005_vm8, %v3676_v1 }
  0xbd   :  { %2137 = vmatmul.mubr.msk.f32.gmra.mxu0 %vm105_vm5, %v3004_v3  ;;  %2442 = vmatprep.subr.bf16.mxu1 %v3676_v1 }
  0xbe   :  { %605 = vmatpush1.bf16.msra.mxu0 %v3167_v21  ;;  %272 = vmatprep.mubr.f32.mxu0 %v3676_v1 }
  0xbf   :  { %606 = vmatprep.subr.bf16.mxu0 %v3170_v22 }
  0xc0   :  { %2443 = vmatpush3.bf16.msra.mxu1 %v3174_v23 }
  0xc1   :  { %2138 = vmatmul.mubr.msk.f32.gmra.mxu0 %vm106_vm6, %v3004_v3  ;;  %2444 = vmatprep.subr.bf16.mxu1 %v3676_v1 }
  0xc2   :  { %607 = vmatpush1.bf16.msra.mxu0 %v3184_v24  ;;  %278 = vmatprep.mubr.f32.mxu0 %v3676_v1 }
  0xc3   :  { %608 = vmatprep.subr.bf16.mxu0 %v3187_v25 }
  0xc4   :  { %2445 = vmatpush3.bf16.msra.mxu1 %v3190_v26 }
  0xc5   :  { %2139 = vmatmul.mubr.msk.f32.gmra.mxu0 %vm107_vm7, %v3004_v3  ;;  %2446 = vmatprep.subr.bf16.mxu1 %v3676_v1 }
  0xc6   :  { %609 = vmatpush1.bf16.msra.mxu0 %v3198_v27  ;;  %626 = vmatprep.mubr.bf16.mxu0 %v3674_v0 }
  0xc7   :  { %700 = vmatprep.subr.bf16.mxu0 %v3078_v57 }
  0xc8   :  { %2447 = vmatpush3.bf16.msra.mxu1 %v3202_v28 }
  0xc9   :  { %627 = vmatmul.mubr.bf16.vlgmr.msra.gmra.mxu0 %v3674_v0  ;;  %2448 = vmatprep.subr.bf16.mxu1 %v3676_v1 }
  0xca   :  { %701 = vmatpush1.bf16.msra.mxu0 %v3085_v61  ;;  %732 = vmatprep.mubr.bf16.mxu0 %v3674_v0 }
  0xcb   :  { %702 = vmatprep.subr.bf16.mxu0 %v3087_v2 }
  0xcc   :  { %2449 = vmatpush3.bf16.msra.mxu1 %v3212_v29 }
  0xcd   :  { %2450 = vmatprep.subr.bf16.mxu1 %v3676_v1 }
  0xce   :  { %703 = vmatpush1.bf16.msra.mxu0 %v3094_v4 }
  0xcf   :  { %704 = vmatprep.subr.bf16.mxu0 %v3097_v7 }
  0xd0   :  { %2451 = vmatpush3.bf16.msra.mxu1 %v3220_v30 }
  0xd1   :  { %2456 = vmatprep.subr.bf16.mxu1 %v3676_v1 }
  0xd2   :  { %705 = vmatpush1.bf16.msra.mxu0 %v3108_v9 }
  0xd3   :  { %2453 = vmatmul.mubr.bf16.vlgmr.msra.gmra.mxu1 %v3674_v0  ;;  %706 = vmatprep.subr.bf16.mxu0 %v3114_v12 }
  0xd4   :  { %2457 = vmatpush3.bf16.msra.mxu1 %v3101_v8  ;;  %2472 = vmatprep.mubr.msk.bf16.mxu1 %vm3005_vm8, %v3676_v1 }
  0xd5   :  { %2458 = vmatprep.subr.bf16.mxu1 %v3676_v1 }
  0xd6   :  { %707 = vmatpush1.bf16.msra.mxu0 %v3128_v13 }
  0xd7   :  { %708 = vmatprep.subr.bf16.mxu0 %v3132_v15 }
  0xd8   :  { %2459 = vmatpush3.bf16.msra.mxu1 %v3137_v16 }
  0xd9   :  { %2460 = vmatprep.subr.bf16.mxu1 %v3676_v1 }
  0xda   :  { %709 = vmatpush1.bf16.msra.mxu0 %v3149_v18 }
  0xdb   :  { %710 = vmatprep.subr.bf16.mxu0 %v3153_v19 }
  0xdc   :  { %2461 = vmatpush3.bf16.msra.mxu1 %v3157_v20 }
  0xdd   :  { %2462 = vmatprep.subr.bf16.mxu1 %v3676_v1 }
  0xde   :  { %711 = vmatpush1.bf16.msra.mxu0 %v3167_v21 }
  0xdf   :  { %712 = vmatprep.subr.bf16.mxu0 %v3170_v22 }
  0xe0   :  { %2463 = vmatpush3.bf16.msra.mxu1 %v3174_v23 }
  0xe1   :  { %2464 = vmatprep.subr.bf16.mxu1 %v3676_v1 }
  0xe2   :  { %713 = vmatpush1.bf16.msra.mxu0 %v3184_v24 }
  0xe3   :  { %714 = vmatprep.subr.bf16.mxu0 %v3187_v25 }
  0xe4   :  { %2465 = vmatpush3.bf16.msra.mxu1 %v3190_v26 }
  0xe5   :  { %2466 = vmatprep.subr.bf16.mxu1 %v3676_v1 }
  0xe6   :  { %715 = vmatpush1.bf16.msra.mxu0 %v3198_v27 }
  0xe7   :  { %806 = vmatprep.subr.bf16.mxu0 %v3078_v57 }
  0xe8   :  { %2467 = vmatpush3.bf16.msra.mxu1 %v3202_v28 }
  0xe9   :  { %2468 = vmatprep.subr.bf16.mxu1 %v3676_v1 }
  0xec   :  { %2469 = vmatpush3.bf16.msra.mxu1 %v3212_v29 }
  0xed   :  { %2470 = vmatprep.subr.bf16.mxu1 %v3676_v1 }
  0xf0   :  { %2471 = vmatpush3.bf16.msra.mxu1 %v3220_v30 }
  0xf1   :  { %2476 = vmatprep.subr.bf16.mxu1 %v3676_v1 }
 0x169   :  { %v238_v31 = vpop.f32.mrf.mxu0 }
 0x16b   :  { %v240_v32 = vpop.f32.mrf.mxu0 }
 0x16d   :  { %v3258_v33 = vpop.f32.mrf.mxu0  ;;  %v3266_v37 = vpop.f32.mrf.mxu1 }
 0x16f   :  { %v3260_v34 = vpop.f32.mrf.mxu0  ;;  %v351_v40 = vpop.f32.mrf.mxu1 }
 0x171   :  { %v3262_v35 = vpop.f32.mrf.mxu0  ;;  %v3276_v43 = vpop.f32.mrf.mxu1 }
 0x173   :  { %v3264_v36 = vpop.f32.mrf.mxu0  ;;  %v3283_v47 = vpop.f32.mrf.mxu1 }
 0x175   :  { %v3268_v38 = vpop.f32.mrf.mxu0  ;;  %v3292_v52 = vpop.f32.mrf.mxu1 }
 0x177   :  { %v3270_v39 = vpop.f32.mrf.mxu0  ;;  %v3300_v58 = vpop.f32.mrf.mxu1 }
 0x179   :  { %v3272_v41 = vpop.f32.mrf.mxu0  ;;  %v3305_v5 = vpop.f32.mrf.mxu1 }
 0x17a   :  { %3681 = vst [vmem:[#allocation16_spill] sm:$0xff] %v3305_v5 }
 0x17b   :  { %v3274_v42 = vpop.f32.mrf.mxu0  ;;  %v3308_v17 = vpop.f32.mrf.mxu1 }
 0x17d   :  { %v3278_v44 = vpop.f32.mrf.mxu0 }
 0x17f   :  { %v3281_v46 = vpop.f32.mrf.mxu0 }
 0x181   :  { %v3285_v48 = vpop.f32.mrf.mxu0 }
 0x183   :  { %v3287_v50 = vpop.f32.mrf.mxu0 }
 0x184   :  { %3678 = vst [vmem:[#allocation13_spill] sm:$0xff] %v3287_v50 }
 0x185   :  { %v3294_v53 = vpop.f32.mrf.mxu0 }
 0x186   :  { %3679 = vst [vmem:[#allocation14_spill] sm:$0xff] %v3294_v53 }
 0x187   :  { %v3298_v56 = vpop.f32.mrf.mxu0 }
 0x188   :  { %3680 = vst [vmem:[#allocation15_spill] sm:$0xff] %v3298_v56 }
 0x189   :  { %v628_v59 = vpop.f32.mrf.mxu0 }
 0x18a   :  { %v629_v60 = vadd.f32 %v628_v59, %v3296_v54 }
 0x18b   :  { %v630_v63 = vpop.f32.mrf.mxu0 }
 0x18c   :  { %v675_v3 = vadd.f32 %v629_v60, %v238_v31  ;;  %v631_v11 = vadd.f32 %v630_v63, %v3303_v62  ;;  %v461_v31 = vsub.s32 2, %v452_v45 }
 0x18d   :  { %v632_v6 = vpop.f32.mrf.mxu0 }
 0x18e   :  { %v2172_v10 = vmul.f32 -1.442695, %v675_v3  ;;  %v676_v49 = vadd.f32 %v631_v11, %v240_v32  ;;  %v3310_v60 = vrot.slane %v414_v51, %v461_v31 }
 0x18f   :  { %v633_v14 = vpop.f32.mrf.mxu0 }
 0x190   :  { %2812 = vpow2.f32 %v2172_v10  ;;  %v2173_v56 = vmul.f32 -1.442695, %v676_v49 }
 0x192   :  { %2814 = vpow2.f32 %v2173_v56 }
 0x193   :  { %v669_v0 = vpop.f32.mrf.mxu1 }
 0x194   :  { %v670_v63 = vadd.f32 %v669_v0, %v3310_v60  ;;  %v3682_v0 = vmov 0.0  }
 0x195   :  { %v2454_v1 = vpop.f32.mrf.mxu1 }
 0x197   :  { %v672_v53 = vpop.f32.mrf.mxu1 }
 0x199   :  { %v2455_v59 = vpop.f32.mrf.mxu1 }
 0x19d   :  { %v2813_v55 = vpop.eup %2812 }
 0x19e   :  { %v683_v50 = vadd.f32 1.0, %v2813_v55 }
 0x19f   :  { %v2815_v3 = vpop.eup %2814 }
 0x1a0   :  { %2816 = vrcp.f32 %v683_v50  ;;  %v684_v6 = vadd.f32 1.0, %v2815_v3 }
 0x1a2   :  { %2818 = vrcp.f32 %v684_v6 }
 0x1ad   :  { %v2817_v10 = vpop.eup %2816 }
 0x1ae   :  { %v689_v14 = vmul.f32 %v2817_v10, %v670_v63 }
 0x1af   :  { %v2819_v1 = vpop.eup %2818 }
 0x1b0   :  { %v690_v32 = vadd.f32 %v689_v14, %v351_v40  ;;  %v692_v11 = vsub.f32 1.0, %v2819_v1  ;;  %v694_v56 = vmul.f32 0.0, %v2819_v1  ;;  %v3683_v40 = vmov 0  }
 0x1b2   :  { %2820 = vtanh.f32 %v690_v32 }
 0x1bf   :  { %v2821_v53 = vpop.eup %2820 }
 0x1c0   :  { %v693_v49 = vmul.f32 %v2821_v53, %v692_v11 }
 0x1c2   :  { %v3313_v59 = vadd.f32 %v694_v56, %v693_v49 }
 0x1c4   :  { %v699_v45 = vpack.c.bf16 %v3313_v59, %v3313_v59 }
 0x1c6   :  { %733 = vmatmul.mubr.bf16.vlgmr.msra.gmra.mxu0 %v699_v45  ;;  %2473 = vmatmul.mubr.bf16.vlgmr.msra.gmra.mxu1 %v699_v45 }
 0x1c7   :  { %807 = vmatpush1.bf16.msra.mxu0 %v3085_v61  ;;  %2477 = vmatpush3.bf16.msra.mxu1 %v3101_v8 }
 0x1c8   :  { %808 = vmatprep.subr.bf16.mxu0 %v3087_v2  ;;  %2478 = vmatprep.subr.bf16.mxu1 %v3682_v0 }
 0x1c9   :  { %838 = vmatprep.mubr.bf16.mxu0 %v3683_v40  ;;  %2492 = vmatprep.mubr.msk.bf16.mxu1 %vm3005_vm8, %v3682_v0 }
 0x1cb   :  { %809 = vmatpush1.bf16.msra.mxu0 %v3094_v4  ;;  %2479 = vmatpush3.bf16.msra.mxu1 %v3137_v16 }
 0x1cc   :  { %810 = vmatprep.subr.bf16.mxu0 %v3097_v7  ;;  %2480 = vmatprep.subr.bf16.mxu1 %v3682_v0 }
 0x1cf   :  { %811 = vmatpush1.bf16.msra.mxu0 %v3108_v9  ;;  %2481 = vmatpush3.bf16.msra.mxu1 %v3157_v20 }
 0x1d0   :  { %812 = vmatprep.subr.bf16.mxu0 %v3114_v12  ;;  %2482 = vmatprep.subr.bf16.mxu1 %v3682_v0 }
 0x1d3   :  { %813 = vmatpush1.bf16.msra.mxu0 %v3128_v13  ;;  %2483 = vmatpush3.bf16.msra.mxu1 %v3174_v23 }
 0x1d4   :  { %814 = vmatprep.subr.bf16.mxu0 %v3132_v15  ;;  %2484 = vmatprep.subr.bf16.mxu1 %v3682_v0 }
 0x1d7   :  { %815 = vmatpush1.bf16.msra.mxu0 %v3149_v18  ;;  %2485 = vmatpush3.bf16.msra.mxu1 %v3190_v26 }
 0x1d8   :  { %816 = vmatprep.subr.bf16.mxu0 %v3153_v19  ;;  %2486 = vmatprep.subr.bf16.mxu1 %v3682_v0 }
 0x1db   :  { %817 = vmatpush1.bf16.msra.mxu0 %v3167_v21  ;;  %2487 = vmatpush3.bf16.msra.mxu1 %v3202_v28 }
 0x1dc   :  { %818 = vmatprep.subr.bf16.mxu0 %v3170_v22  ;;  %2488 = vmatprep.subr.bf16.mxu1 %v3682_v0 }
 0x1df   :  { %819 = vmatpush1.bf16.msra.mxu0 %v3184_v24  ;;  %2489 = vmatpush3.bf16.msra.mxu1 %v3212_v29 }
 0x1e0   :  { %820 = vmatprep.subr.bf16.mxu0 %v3187_v25  ;;  %2490 = vmatprep.subr.bf16.mxu1 %v3682_v0 }
 0x1e3   :  { %821 = vmatpush1.bf16.msra.mxu0 %v3198_v27  ;;  %2491 = vmatpush3.bf16.msra.mxu1 %v3220_v30 }
 0x1e4   :  { %912 = vmatprep.subr.bf16.mxu0 %v3078_v57  ;;  %2496 = vmatprep.subr.bf16.mxu1 %v3682_v0 }
 0x286   :  { %v734_v50 = vpop.f32.mrf.mxu0  ;;  %v775_v51 = vpop.f32.mrf.mxu1 }
 0x287   :  { %v735_v55 = vadd.f32 %v734_v50, %v3296_v54 }
 0x288   :  { %v736_v31 = vpop.f32.mrf.mxu0  ;;  %v2474_v3 = vpop.f32.mrf.mxu1 }
 0x289   :  { %v781_v6 = vadd.f32 %v735_v55, %v3258_v33  ;;  %v737_v32 = vadd.f32 %v736_v31, %v3303_v62  ;;  %v776_v3 = vadd.f32 %v775_v51, %v3310_v60 }
 0x28a   :  { %v738_v63 = vpop.f32.mrf.mxu0  ;;  %v778_v10 = vpop.f32.mrf.mxu1 }
 0x28b   :  { %v2174_v14 = vmul.f32 -1.442695, %v781_v6  ;;  %v782_v53 = vadd.f32 %v737_v32, %v3260_v34 }
 0x28c   :  { %v739_v1 = vpop.f32.mrf.mxu0  ;;  %v2475_v11 = vpop.f32.mrf.mxu1 }
 0x28d   :  { %2822 = vpow2.f32 %v2174_v14  ;;  %v2175_v49 = vmul.f32 -1.442695, %v782_v53 }
 0x28f   :  { %2824 = vpow2.f32 %v2175_v49 }
 0x29a   :  { %v2823_v56 = vpop.eup %2822 }
 0x29b   :  { %v789_v45 = vadd.f32 1.0, %v2823_v56 }
 0x29c   :  { %v2825_v50 = vpop.eup %2824 }
 0x29d   :  { %2826 = vrcp.f32 %v789_v45  ;;  %v790_v5 = vadd.f32 1.0, %v2825_v50 }
 0x29f   :  { %2828 = vrcp.f32 %v790_v5 }
 0x2aa   :  { %v2827_v33 = vpop.eup %2826 }
 0x2ab   :  { %v795_v55 = vmul.f32 %v2827_v33, %v776_v3 }
 0x2ac   :  { %v2829_v31 = vpop.eup %2828 }
 0x2ad   :  { %v796_v6 = vadd.f32 %v3266_v37, %v795_v55  ;;  %v798_v63 = vsub.f32 1.0, %v2829_v31  ;;  %v800_v34 = vmul.f32 %v2829_v31, %v3313_v59 }
 0x2af   :  { %2830 = vtanh.f32 %v796_v6 }
 0x2bc   :  { %v2831_v10 = vpop.eup %2830 }
 0x2bd   :  { %v799_v14 = vmul.f32 %v2831_v10, %v798_v63 }
 0x2bf   :  { %v3359_v32 = vadd.f32 %v800_v34, %v799_v14 }
 0x2c1   :  { %v805_v1 = vpack.c.bf16 %v3359_v32, %v3359_v32 }
 0x2c3   :  { %839 = vmatmul.mubr.bf16.vlgmr.msra.gmra.mxu0 %v805_v1  ;;  %2493 = vmatmul.mubr.bf16.vlgmr.msra.gmra.mxu1 %v805_v1 }
 0x2c4   :  { %913 = vmatpush1.bf16.msra.mxu0 %v3085_v61  ;;  %2497 = vmatpush3.bf16.msra.mxu1 %v3101_v8 }
 0x2c5   :  { %914 = vmatprep.subr.bf16.mxu0 %v3087_v2  ;;  %2498 = vmatprep.subr.bf16.mxu1 %v3682_v0 }
 0x2c6   :  { %944 = vmatprep.mubr.bf16.mxu0 %v3683_v40  ;;  %2512 = vmatprep.mubr.msk.bf16.mxu1 %vm3005_vm8, %v3682_v0 }
 0x2c8   :  { %915 = vmatpush1.bf16.msra.mxu0 %v3094_v4  ;;  %2499 = vmatpush3.bf16.msra.mxu1 %v3137_v16 }
 0x2c9   :  { %916 = vmatprep.subr.bf16.mxu0 %v3097_v7  ;;  %2500 = vmatprep.subr.bf16.mxu1 %v3682_v0 }
 0x2cc   :  { %917 = vmatpush1.bf16.msra.mxu0 %v3108_v9  ;;  %2501 = vmatpush3.bf16.msra.mxu1 %v3157_v20 }
 0x2cd   :  { %918 = vmatprep.subr.bf16.mxu0 %v3114_v12  ;;  %2502 = vmatprep.subr.bf16.mxu1 %v3682_v0 }
 0x2d0   :  { %919 = vmatpush1.bf16.msra.mxu0 %v3128_v13  ;;  %2503 = vmatpush3.bf16.msra.mxu1 %v3174_v23 }
 0x2d1   :  { %920 = vmatprep.subr.bf16.mxu0 %v3132_v15  ;;  %2504 = vmatprep.subr.bf16.mxu1 %v3682_v0 }
 0x2d4   :  { %921 = vmatpush1.bf16.msra.mxu0 %v3149_v18  ;;  %2505 = vmatpush3.bf16.msra.mxu1 %v3190_v26 }
 0x2d5   :  { %922 = vmatprep.subr.bf16.mxu0 %v3153_v19  ;;  %2506 = vmatprep.subr.bf16.mxu1 %v3682_v0 }
 0x2d8   :  { %923 = vmatpush1.bf16.msra.mxu0 %v3167_v21  ;;  %2507 = vmatpush3.bf16.msra.mxu1 %v3202_v28 }
 0x2d9   :  { %924 = vmatprep.subr.bf16.mxu0 %v3170_v22  ;;  %2508 = vmatprep.subr.bf16.mxu1 %v3682_v0 }
 0x2dc   :  { %925 = vmatpush1.bf16.msra.mxu0 %v3184_v24  ;;  %2509 = vmatpush3.bf16.msra.mxu1 %v3212_v29 }
 0x2dd   :  { %926 = vmatprep.subr.bf16.mxu0 %v3187_v25  ;;  %2510 = vmatprep.subr.bf16.mxu1 %v3682_v0 }
 0x2e0   :  { %927 = vmatpush1.bf16.msra.mxu0 %v3198_v27  ;;  %2511 = vmatpush3.bf16.msra.mxu1 %v3220_v30 }
 0x2e1   :  { %1018 = vmatprep.subr.bf16.mxu0 %v3078_v57  ;;  %2516 = vmatprep.subr.bf16.mxu1 %v3682_v0 }
 0x383   :  { %v840_v37 = vpop.f32.mrf.mxu0  ;;  %v881_v5 = vpop.f32.mrf.mxu1 }
 0x384   :  { %v841_v59 = vadd.f32 %v840_v37, %v3296_v54  ;;  %v882_v34 = vadd.f32 %v881_v5, %v3310_v60 }
 0x385   :  { %v842_v51 = vpop.f32.mrf.mxu0  ;;  %v2494_v11 = vpop.f32.mrf.mxu1 }
 0x386   :  { %v887_v53 = vadd.f32 %v841_v59, %v3262_v35  ;;  %v843_v50 = vadd.f32 %v842_v51, %v3303_v62 }
 0x387   :  { %v844_v49 = vpop.f32.mrf.mxu0  ;;  %v884_v56 = vpop.f32.mrf.mxu1 }
 0x388   :  { %v2176_v45 = vmul.f32 -1.442695, %v887_v53  ;;  %v888_v55 = vadd.f32 %v843_v50, %v3264_v36 }
 0x389   :  { %v845_v3 = vpop.f32.mrf.mxu0  ;;  %v2495_v33 = vpop.f32.mrf.mxu1 }
 0x38a   :  { %2832 = vpow2.f32 %v2176_v45  ;;  %v2177_v6 = vmul.f32 -1.442695, %v888_v55 }
 0x38c   :  { %2834 = vpow2.f32 %v2177_v6 }
 0x397   :  { %v2833_v31 = vpop.eup %2832 }
 0x398   :  { %v895_v63 = vadd.f32 1.0, %v2833_v31 }
 0x399   :  { %v2835_v10 = vpop.eup %2834 }
 0x39a   :  { %2836 = vrcp.f32 %v895_v63  ;;  %v896_v14 = vadd.f32 1.0, %v2835_v10 }
 0x39c   :  { %2838 = vrcp.f32 %v896_v14 }
 0x3a7   :  { %v2837_v35 = vpop.eup %2836 }
 0x3a8   :  { %v901_v1 = vmul.f32 %v2837_v35, %v882_v34 }
 0x3a9   :  { %v2839_v59 = vpop.eup %2838 }
 0x3aa   :  { %v902_v37 = vadd.f32 %v901_v1, %v3283_v47  ;;  %v904_v51 = vsub.f32 1.0, %v2839_v59  ;;  %v906_v36 = vmul.f32 %v2839_v59, %v3359_v32 }
 0x3ac   :  { %2840 = vtanh.f32 %v902_v37 }
 0x3b9   :  { %v2841_v11 = vpop.eup %2840 }
 0x3ba   :  { %v905_v53 = vmul.f32 %v2841_v11, %v904_v51 }
 0x3bc   :  { %v3405_v49 = vadd.f32 %v906_v36, %v905_v53 }
 0x3be   :  { %v911_v56 = vpack.c.bf16 %v3405_v49, %v3405_v49 }
 0x3c0   :  { %945 = vmatmul.mubr.bf16.vlgmr.msra.gmra.mxu0 %v911_v56  ;;  %2513 = vmatmul.mubr.bf16.vlgmr.msra.gmra.mxu1 %v911_v56 }
 0x3c1   :  { %1019 = vmatpush1.bf16.msra.mxu0 %v3085_v61  ;;  %2517 = vmatpush3.bf16.msra.mxu1 %v3101_v8 }
 0x3c2   :  { %1020 = vmatprep.subr.bf16.mxu0 %v3087_v2  ;;  %2518 = vmatprep.subr.bf16.mxu1 %v3682_v0 }
 0x3c3   :  { %1050 = vmatprep.mubr.bf16.mxu0 %v3683_v40  ;;  %2532 = vmatprep.mubr.msk.bf16.mxu1 %vm3005_vm8, %v3682_v0 }
 0x3c5   :  { %1021 = vmatpush1.bf16.msra.mxu0 %v3094_v4  ;;  %2519 = vmatpush3.bf16.msra.mxu1 %v3137_v16 }
 0x3c6   :  { %1022 = vmatprep.subr.bf16.mxu0 %v3097_v7  ;;  %2520 = vmatprep.subr.bf16.mxu1 %v3682_v0 }
 0x3c9   :  { %1023 = vmatpush1.bf16.msra.mxu0 %v3108_v9  ;;  %2521 = vmatpush3.bf16.msra.mxu1 %v3157_v20 }
 0x3ca   :  { %1024 = vmatprep.subr.bf16.mxu0 %v3114_v12  ;;  %2522 = vmatprep.subr.bf16.mxu1 %v3682_v0 }
 0x3cd   :  { %1025 = vmatpush1.bf16.msra.mxu0 %v3128_v13  ;;  %2523 = vmatpush3.bf16.msra.mxu1 %v3174_v23 }
 0x3ce   :  { %1026 = vmatprep.subr.bf16.mxu0 %v3132_v15  ;;  %2524 = vmatprep.subr.bf16.mxu1 %v3682_v0 }
 0x3d1   :  { %1027 = vmatpush1.bf16.msra.mxu0 %v3149_v18  ;;  %2525 = vmatpush3.bf16.msra.mxu1 %v3190_v26 }
 0x3d2   :  { %1028 = vmatprep.subr.bf16.mxu0 %v3153_v19  ;;  %2526 = vmatprep.subr.bf16.mxu1 %v3682_v0 }
 0x3d5   :  { %1029 = vmatpush1.bf16.msra.mxu0 %v3167_v21  ;;  %2527 = vmatpush3.bf16.msra.mxu1 %v3202_v28 }
 0x3d6   :  { %1030 = vmatprep.subr.bf16.mxu0 %v3170_v22  ;;  %2528 = vmatprep.subr.bf16.mxu1 %v3682_v0 }
 0x3d9   :  { %1031 = vmatpush1.bf16.msra.mxu0 %v3184_v24  ;;  %2529 = vmatpush3.bf16.msra.mxu1 %v3212_v29 }
 0x3da   :  { %1032 = vmatprep.subr.bf16.mxu0 %v3187_v25  ;;  %2530 = vmatprep.subr.bf16.mxu1 %v3682_v0 }
 0x3dd   :  { %1033 = vmatpush1.bf16.msra.mxu0 %v3198_v27  ;;  %2531 = vmatpush3.bf16.msra.mxu1 %v3220_v30 }
 0x3de   :  { %1124 = vmatprep.subr.bf16.mxu0 %v3078_v57  ;;  %2536 = vmatprep.subr.bf16.mxu1 %v3682_v0 }
 0x480   :  { %v946_v47 = vpop.f32.mrf.mxu0  ;;  %v987_v32 = vpop.f32.mrf.mxu1 }
 0x481   :  { %v947_v5 = vadd.f32 %v946_v47, %v3296_v54  ;;  %v988_v59 = vadd.f32 %v987_v32, %v3310_v60 }
 0x482   :  { %v948_v45 = vpop.f32.mrf.mxu0  ;;  %v2514_v50 = vpop.f32.mrf.mxu1 }
 0x483   :  { %v993_v3 = vadd.f32 %v947_v5, %v3268_v38  ;;  %v949_v31 = vadd.f32 %v948_v45, %v3303_v62 }
 0x484   :  { %v950_v33 = vpop.f32.mrf.mxu0  ;;  %v990_v55 = vpop.f32.mrf.mxu1 }
 0x485   :  { %v2178_v6 = vmul.f32 -1.442695, %v993_v3  ;;  %v994_v57 = vadd.f32 %v949_v31, %v3270_v39 }
 0x486   :  { %v951_v63 = vpop.f32.mrf.mxu0  ;;  %v2515_v10 = vpop.f32.mrf.mxu1 }
 0x487   :  { %2842 = vpow2.f32 %v2178_v6  ;;  %v2179_v14 = vmul.f32 -1.442695, %v994_v57 }
 0x489   :  { %2844 = vpow2.f32 %v2179_v14 }
 0x494   :  { %v2843_v34 = vpop.eup %2842 }
 0x495   :  { %v1001_v35 = vadd.f32 1.0, %v2843_v34 }
 0x496   :  { %v2845_v1 = vpop.eup %2844 }
 0x497   :  { %2846 = vrcp.f32 %v1001_v35  ;;  %v1002_v37 = vadd.f32 1.0, %v2845_v1 }
 0x499   :  { %2848 = vrcp.f32 %v1002_v37 }
 0x4a4   :  { %v2847_v38 = vpop.eup %2846 }
 0x4a5   :  { %v1007_v51 = vmul.f32 %v2847_v38, %v988_v59 }
 0x4a6   :  { %v2849_v53 = vpop.eup %2848 }
 0x4a7   :  { %v1008_v11 = vadd.f32 %v3276_v43, %v1007_v51  ;;  %v1010_v36 = vsub.f32 1.0, %v2849_v53  ;;  %v1012_v39 = vmul.f32 %v2849_v53, %v3405_v49  ;;  %v3488_v43 = vld [vmem:[#allocation6 + $0xac] ss:$12 sps:$4 sm:$0xff]  }
 0x4a9   :  { %2850 = vtanh.f32 %v1008_v11 }
 0x4b6   :  { %v2851_v56 = vpop.eup %2850 }
 0x4b7   :  { %v1011_v47 = vmul.f32 %v2851_v56, %v1010_v36 }
 0x4b9   :  { %v3451_v5 = vadd.f32 %v1012_v39, %v1011_v47 }
 0x4bb   :  { %v1017_v45 = vpack.c.bf16 %v3451_v5, %v3451_v5 }
 0x4bd   :  { %1051 = vmatmul.mubr.bf16.vlgmr.msra.gmra.mxu0 %v1017_v45  ;;  %2533 = vmatmul.mubr.bf16.vlgmr.msra.gmra.mxu1 %v1017_v45 }
 0x4be   :  { %1125 = vmatpush1.bf16.msra.mxu0 %v3085_v61  ;;  %2537 = vmatpush3.bf16.msra.mxu1 %v3101_v8 }
 0x4bf   :  { %1126 = vmatprep.subr.bf16.mxu0 %v3087_v2  ;;  %2538 = vmatprep.subr.bf16.mxu1 %v3682_v0 }
 0x4c0   :  { %1156 = vmatprep.mubr.bf16.mxu0 %v3683_v40  ;;  %2552 = vmatprep.mubr.msk.bf16.mxu1 %vm3005_vm8, %v3682_v0 }
 0x4c2   :  { %1127 = vmatpush1.bf16.msra.mxu0 %v3094_v4  ;;  %2539 = vmatpush3.bf16.msra.mxu1 %v3137_v16 }
 0x4c3   :  { %1128 = vmatprep.subr.bf16.mxu0 %v3097_v7  ;;  %2540 = vmatprep.subr.bf16.mxu1 %v3682_v0 }
 0x4c6   :  { %1129 = vmatpush1.bf16.msra.mxu0 %v3108_v9  ;;  %2541 = vmatpush3.bf16.msra.mxu1 %v3157_v20 }
 0x4c7   :  { %1130 = vmatprep.subr.bf16.mxu0 %v3114_v12  ;;  %2542 = vmatprep.subr.bf16.mxu1 %v3682_v0 }
 0x4ca   :  { %1131 = vmatpush1.bf16.msra.mxu0 %v3128_v13  ;;  %2543 = vmatpush3.bf16.msra.mxu1 %v3174_v23 }
 0x4cb   :  { %1132 = vmatprep.subr.bf16.mxu0 %v3132_v15  ;;  %2544 = vmatprep.subr.bf16.mxu1 %v3682_v0 }
 0x4ce   :  { %1133 = vmatpush1.bf16.msra.mxu0 %v3149_v18  ;;  %2545 = vmatpush3.bf16.msra.mxu1 %v3190_v26 }
 0x4cf   :  { %1134 = vmatprep.subr.bf16.mxu0 %v3153_v19  ;;  %2546 = vmatprep.subr.bf16.mxu1 %v3682_v0 }
 0x4d2   :  { %1135 = vmatpush1.bf16.msra.mxu0 %v3167_v21  ;;  %2547 = vmatpush3.bf16.msra.mxu1 %v3202_v28 }
 0x4d3   :  { %1136 = vmatprep.subr.bf16.mxu0 %v3170_v22  ;;  %2548 = vmatprep.subr.bf16.mxu1 %v3682_v0 }
 0x4d6   :  { %1137 = vmatpush1.bf16.msra.mxu0 %v3184_v24  ;;  %2549 = vmatpush3.bf16.msra.mxu1 %v3212_v29 }
 0x4d7   :  { %1138 = vmatprep.subr.bf16.mxu0 %v3187_v25  ;;  %2550 = vmatprep.subr.bf16.mxu1 %v3682_v0 }
 0x4da   :  { %1139 = vmatpush1.bf16.msra.mxu0 %v3198_v27  ;;  %2551 = vmatpush3.bf16.msra.mxu1 %v3220_v30 }
 0x4db   :  { %1230 = vmatprep.subr.bf16.mxu0 %v3488_v43  ;;  %2556 = vmatprep.subr.bf16.mxu1 %v3682_v0 }
 0x57d   :  { %v1052_v49 = vpop.f32.mrf.mxu0  ;;  %v1093_v32 = vpop.f32.mrf.mxu1 }
 0x57e   :  { %v1053_v50 = vadd.f32 %v1052_v49, %v3296_v54  ;;  %v1094_v51 = vadd.f32 %v1093_v32, %v3310_v60 }
 0x57f   :  { %v1054_v3 = vpop.f32.mrf.mxu0  ;;  %v2534_v33 = vpop.f32.mrf.mxu1 }
 0x580   :  { %v1099_v55 = vadd.f32 %v1053_v50, %v3272_v41  ;;  %v1055_v10 = vadd.f32 %v1054_v3, %v3303_v62 }
 0x581   :  { %v1056_v6 = vpop.f32.mrf.mxu0  ;;  %v1096_v31 = vpop.f32.mrf.mxu1 }
 0x582   :  { %v2180_v63 = vmul.f32 -1.442695, %v1099_v55  ;;  %v1100_v34 = vadd.f32 %v1055_v10, %v3274_v42 }
 0x583   :  { %v1057_v57 = vpop.f32.mrf.mxu0  ;;  %v2535_v14 = vpop.f32.mrf.mxu1 }
 0x584   :  { %2852 = vpow2.f32 %v2180_v63  ;;  %v2181_v35 = vmul.f32 -1.442695, %v1100_v34  ;;  %v2893_v14 = vld [vmem:[#allocation6 + $0xa8] ss:$12 sps:$4 sm:$0xff]   ;;  %v2894_v34 = vld [vmem:[#allocation6 + $0xb0] ss:$12 sps:$4 sm:$0xff]  }
 0x586   :  { %2854 = vpow2.f32 %v2181_v35  ;;  %v2895_v35 = vld [vmem:[#allocation6 + $0x94] ss:$12 sps:$4 sm:$0xff]  }
 0x591   :  { %v2853_v1 = vpop.eup %2852 }
 0x592   :  { %v1107_v37 = vadd.f32 1.0, %v2853_v1  ;;  %v2897_v1 = vld [vmem:[#allocation6 + $0x98] ss:$12 sps:$4 sm:$0xff]  }
 0x593   :  { %v2855_v59 = vpop.eup %2854 }
 0x594   :  { %2856 = vrcp.f32 %v1107_v37  ;;  %v1108_v38 = vadd.f32 1.0, %v2855_v59  ;;  %v2898_v37 = vld [vmem:[#allocation6 + $0x7c] ss:$12 sps:$4 sm:$0xff]   ;;  %v2899_v59 = vld [vmem:[#allocation6 + $0x78] ss:$12 sps:$4 sm:$0xff]  }
 0x596   :  { %2858 = vrcp.f32 %v1108_v38  ;;  %v2900_v38 = vld [vmem:[#allocation6 + $0x64] ss:$12 sps:$4 sm:$0xff]  }
 0x5a1   :  { %v2857_v41 = vpop.eup %2856 }
 0x5a2   :  { %v1113_v11 = vmul.f32 %v2857_v41, %v1094_v51  ;;  %v2902_v51 = vld [vmem:[#allocation6 + $0x4c] ss:$12 sps:$4 sm:$0xff]   ;;  %v2903_v41 = vld [vmem:[#allocation6 + $0x48] ss:$12 sps:$4 sm:$0xff]  }
 0x5a3   :  { %v2859_v36 = vpop.eup %2858 }
 0x5a4   :  { %v1114_v53 = vadd.f32 %v1113_v11, %v3300_v58  ;;  %v1116_v56 = vsub.f32 1.0, %v2859_v36  ;;  %v1118_v42 = vmul.f32 %v2859_v36, %v3451_v5  ;;  %v2904_v11 = vld [vmem:[#allocation6 + $0x34] ss:$12 sps:$4 sm:$0xff]  }
 0x5a6   :  { %2860 = vtanh.f32 %v1114_v53  ;;  %v2906_v53 = vld [vmem:[#allocation6 + $0x1c] ss:$12 sps:$4 sm:$0xff]  }
 0x5b3   :  { %v2861_v47 = vpop.eup %2860 }
 0x5b4   :  { %v1117_v39 = vmul.f32 %v2861_v47, %v1116_v56 }
 0x5b6   :  { %v3499_v45 = vadd.f32 %v1118_v42, %v1117_v39 }
 0x5b8   :  { %v1123_v49 = vpack.c.bf16 %v3499_v45, %v3499_v45 }
 0x5ba   :  { %1157 = vmatmul.mubr.bf16.vlgmr.msra.gmra.mxu0 %v1123_v49  ;;  %2553 = vmatmul.mubr.bf16.vlgmr.msra.gmra.mxu1 %v1123_v49 }
 0x5bb   :  { %1231 = vmatpush1.bf16.msra.mxu0 %v3085_v61  ;;  %2557 = vmatpush3.bf16.msra.mxu1 %v3101_v8 }
 0x5bc   :  { %1232 = vmatprep.subr.bf16.mxu0 %v3087_v2  ;;  %2558 = vmatprep.subr.bf16.mxu1 %v3682_v0 }
 0x5bd   :  { %1262 = vmatprep.mubr.bf16.mxu0 %v3683_v40  ;;  %2572 = vmatprep.mubr.msk.bf16.mxu1 %vm3005_vm8, %v3682_v0 }
 0x5bf   :  { %1233 = vmatpush1.bf16.msra.mxu0 %v3094_v4  ;;  %2559 = vmatpush3.bf16.msra.mxu1 %v3137_v16 }
 0x5c0   :  { %1234 = vmatprep.subr.bf16.mxu0 %v3097_v7  ;;  %2560 = vmatprep.subr.bf16.mxu1 %v3682_v0 }
 0x5c3   :  { %1235 = vmatpush1.bf16.msra.mxu0 %v3108_v9  ;;  %2561 = vmatpush3.bf16.msra.mxu1 %v3157_v20 }
 0x5c4   :  { %1236 = vmatprep.subr.bf16.mxu0 %v3114_v12  ;;  %2562 = vmatprep.subr.bf16.mxu1 %v3682_v0 }
 0x5c7   :  { %1237 = vmatpush1.bf16.msra.mxu0 %v3128_v13  ;;  %2563 = vmatpush3.bf16.msra.mxu1 %v3174_v23 }
 0x5c8   :  { %1238 = vmatprep.subr.bf16.mxu0 %v3132_v15  ;;  %2564 = vmatprep.subr.bf16.mxu1 %v3682_v0 }
 0x5cb   :  { %1239 = vmatpush1.bf16.msra.mxu0 %v3149_v18  ;;  %2565 = vmatpush3.bf16.msra.mxu1 %v3190_v26 }
 0x5cc   :  { %1240 = vmatprep.subr.bf16.mxu0 %v3153_v19  ;;  %2566 = vmatprep.subr.bf16.mxu1 %v3682_v0 }
 0x5cf   :  { %1241 = vmatpush1.bf16.msra.mxu0 %v3167_v21  ;;  %2567 = vmatpush3.bf16.msra.mxu1 %v3202_v28 }
 0x5d0   :  { %1242 = vmatprep.subr.bf16.mxu0 %v3170_v22  ;;  %2568 = vmatprep.subr.bf16.mxu1 %v3682_v0 }
 0x5d3   :  { %1243 = vmatpush1.bf16.msra.mxu0 %v3184_v24  ;;  %2569 = vmatpush3.bf16.msra.mxu1 %v3212_v29 }
 0x5d4   :  { %1244 = vmatprep.subr.bf16.mxu0 %v3187_v25  ;;  %2570 = vmatprep.subr.bf16.mxu1 %v3682_v0 }
 0x5d7   :  { %1245 = vmatpush1.bf16.msra.mxu0 %v3198_v27  ;;  %2571 = vmatpush3.bf16.msra.mxu1 %v3220_v30 }
 0x5d8   :  { %1336 = vmatprep.subr.bf16.mxu0 %v3488_v43  ;;  %2576 = vmatprep.subr.bf16.mxu1 %v3682_v0 }
 0x67a   :  { %v1158_v61 = vpop.f32.mrf.mxu0  ;;  %v1199_v2 = vpop.f32.mrf.mxu1 }
 0x67b   :  { %v1159_v4 = vadd.f32 %v1158_v61, %v3296_v54  ;;  %v1200_v50 = vadd.f32 %v1199_v2, %v3310_v60 }
 0x67c   :  { %v1160_v7 = vpop.f32.mrf.mxu0  ;;  %v2554_v8 = vpop.f32.mrf.mxu1 }
 0x67d   :  { %v1205_v9 = vadd.f32 %v1159_v4, %v3278_v44  ;;  %v1161_v16 = vadd.f32 %v1160_v7, %v3303_v62 }
 0x67e   :  { %v1162_v12 = vpop.f32.mrf.mxu0  ;;  %v1202_v13 = vpop.f32.mrf.mxu1 }
 0x67f   :  { %v2182_v15 = vmul.f32 -1.442695, %v1205_v9  ;;  %v1206_v21 = vadd.f32 %v1161_v16, %v3281_v46 }
 0x680   :  { %v1163_v18 = vpop.f32.mrf.mxu0  ;;  %v2555_v19 = vpop.f32.mrf.mxu1 }
 0x681   :  { %2862 = vpow2.f32 %v2182_v15  ;;  %v2183_v22 = vmul.f32 -1.442695, %v1206_v21 }
 0x683   :  { %2864 = vpow2.f32 %v2183_v22 }
 0x68e   :  { %v2863_v58 = vpop.eup %2862 }
 0x68f   :  { %v1213_v5 = vadd.f32 1.0, %v2863_v58  ;;  %v2765_v58 = vld [vmem:[#allocation8 + $0x30] sm:$0xff]  }
 0x690   :  { %v2865_v43 = vpop.eup %2864 }
 0x691   :  { %2866 = vrcp.f32 %v1213_v5  ;;  %v1214_v32 = vadd.f32 1.0, %v2865_v43  ;;  %v2766_v5 = vld [vmem:[#allocation8 + $0x28] sm:$0xff]   ;;  %v2767_v43 = vld [vmem:[#allocation8 + $0x20] sm:$0xff]  }
 0x693   :  { %2868 = vrcp.f32 %v1214_v32  ;;  %v2768_v32 = vld [vmem:[#allocation8 + $0x18] sm:$0xff]  }
 0x69e   :  { %v2867_v44 = vpop.eup %2866 }
 0x69f   :  { %v1219_v3 = vmul.f32 %v2867_v44, %v1200_v50  ;;  %v2769_v50 = vld [vmem:[#allocation8 + $0x10] sm:$0xff]   ;;  %v2770_v44 = vld [vmem:[#allocation8 + $0x8] sm:$0xff]  }
 0x6a0   :  { %v2869_v55 = vpop.eup %2868 }
 0x6a1   :  { %v1220_v33 = vadd.f32 %v3292_v52, %v1219_v3  ;;  %v1222_v6 = vsub.f32 1.0, %v2869_v55  ;;  %v1224_v46 = vmul.f32 %v2869_v55, %v3499_v45  ;;  %v2896_v52 = vld [vmem:[#allocation6 + $0x90] ss:$12 sps:$4 sm:$0xff]   ;;  %v2771_v3 = vld [vmem:[#allocation8] sm:$0xff]  }
 0x6a2   :  { %v2773_v55 = vld [vmem:[#allocation8 + $0x70] sm:$0xff]  }
 0x6a3   :  { %2870 = vtanh.f32 %v1220_v33  ;;  %v2772_v33 = vld [vmem:[#allocation8 + $0x78] sm:$0xff]  }
 0x6b0   :  { %v2871_v31 = vpop.eup %2870 }
 0x6b1   :  { %v1223_v63 = vmul.f32 %v2871_v31, %v1222_v6  ;;  %v2774_v6 = vld [vmem:[#allocation8 + $0x68] sm:$0xff]   ;;  %v2775_v31 = vld [vmem:[#allocation8 + $0x60] sm:$0xff]  }
 0x6b3   :  { %v3545_v10 = vadd.f32 %v1224_v46, %v1223_v63  ;;  %v2776_v63 = vld [vmem:[#allocation8 + $0x58] sm:$0xff]   ;;  %v2777_v46 = vld [vmem:[#allocation8 + $0x50] sm:$0xff]  }
 0x6b5   :  { %v1229_v57 = vpack.c.bf16 %v3545_v10, %v3545_v10 }
 0x6b7   :  { %1263 = vmatmul.mubr.bf16.vlgmr.msra.gmra.mxu0 %v1229_v57  ;;  %2573 = vmatmul.mubr.bf16.vlgmr.msra.gmra.mxu1 %v1229_v57 }
 0x6b8   :  { %1337 = vmatpush1.bf16.msra.mxu0 %v2893_v14  ;;  %2577 = vmatpush3.bf16.msra.mxu1 %v2894_v34 }
 0x6b9   :  { %1338 = vmatprep.subr.bf16.mxu0 %v2895_v35  ;;  %2578 = vmatprep.subr.bf16.mxu1 %v3682_v0 }
 0x6ba   :  { %1368 = vmatprep.mubr.bf16.mxu0 %v3683_v40  ;;  %2592 = vmatprep.mubr.msk.bf16.mxu1 %vm3005_vm8, %v3682_v0  ;;  %v2901_v40 = vld [vmem:[#allocation6 + $0x60] ss:$12 sps:$4 sm:$0xff]  }
 0x6bc   :  { %1339 = vmatpush1.bf16.msra.mxu0 %v2896_v52  ;;  %2579 = vmatpush3.bf16.msra.mxu1 %v2897_v1  ;;  %v3685_v1 = vld [vmem:[#allocation14_spill] sm:$0xff] }
 0x6bd   :  { %1340 = vmatprep.subr.bf16.mxu0 %v2898_v37  ;;  %2580 = vmatprep.subr.bf16.mxu1 %v3682_v0 }
 0x6c0   :  { %1341 = vmatpush1.bf16.msra.mxu0 %v2899_v59  ;;  %2581 = vmatpush3.bf16.msra.mxu1 %v3157_v20  ;;  %v2905_v20 = vld [vmem:[#allocation6 + $0x30] ss:$12 sps:$4 sm:$0xff]  }
 0x6c1   :  { %1342 = vmatprep.subr.bf16.mxu0 %v2900_v38  ;;  %2582 = vmatprep.subr.bf16.mxu1 %v3682_v0 }
 0x6c4   :  { %1343 = vmatpush1.bf16.msra.mxu0 %v2901_v40  ;;  %2583 = vmatpush3.bf16.msra.mxu1 %v3174_v23 }
 0x6c5   :  { %1344 = vmatprep.subr.bf16.mxu0 %v2902_v51  ;;  %2584 = vmatprep.subr.bf16.mxu1 %v3682_v0 }
 0x6c8   :  { %1345 = vmatpush1.bf16.msra.mxu0 %v2903_v41  ;;  %2585 = vmatpush3.bf16.msra.mxu1 %v3190_v26 }
 0x6c9   :  { %1346 = vmatprep.subr.bf16.mxu0 %v2904_v11  ;;  %2586 = vmatprep.subr.bf16.mxu1 %v3682_v0 }
 0x6cc   :  { %1347 = vmatpush1.bf16.msra.mxu0 %v2905_v20  ;;  %2587 = vmatpush3.bf16.msra.mxu1 %v3202_v28  ;;  %v3686_v20 = vld [vmem:[#allocation15_spill] sm:$0xff] }
 0x6cd   :  { %1348 = vmatprep.subr.bf16.mxu0 %v2906_v53  ;;  %2588 = vmatprep.subr.bf16.mxu1 %v3682_v0 }
 0x6d0   :  { %1349 = vmatpush1.bf16.msra.mxu0 %v3184_v24  ;;  %2589 = vmatpush3.bf16.msra.mxu1 %v3212_v29 }
 0x6d1   :  { %1350 = vmatprep.subr.bf16.mxu0 %v3187_v25  ;;  %2590 = vmatprep.subr.bf16.mxu1 %v3682_v0 }
 0x6d4   :  { %1351 = vmatpush1.bf16.msra.mxu0 %v3198_v27  ;;  %2591 = vmatpush3.bf16.msra.mxu1 %v3220_v30  ;;  %v3684_v30 = vld [vmem:[#allocation13_spill] sm:$0xff] }
 0x6d5   :  { %2596 = vmatprep.subr.bf16.mxu0 %v3682_v0  ;;  %2616 = vmatprep.subr.bf16.mxu1 %v3682_v0 }
 0x777   :  { %v1264_v23 = vpop.f32.mrf.mxu0  ;;  %v1305_v26 = vpop.f32.mrf.mxu1 }
 0x778   :  { %v1265_v28 = vadd.f32 %v1264_v23, %v3296_v54  ;;  %v1306_v8 = vadd.f32 %v1305_v26, %v3310_v60 }
 0x779   :  { %v1266_v36 = vpop.f32.mrf.mxu0  ;;  %v2574_v24 = vpop.f32.mrf.mxu1 }
 0x77a   :  { %v1311_v29 = vadd.f32 %v1265_v28, %v3285_v48  ;;  %v1267_v39 = vadd.f32 %v1266_v36, %v3303_v62 }
 0x77b   :  { %v1268_v56 = vpop.f32.mrf.mxu0  ;;  %v1308_v25 = vpop.f32.mrf.mxu1 }
 0x77c   :  { %v2184_v47 = vmul.f32 -1.442695, %v1311_v29  ;;  %v1312_v45 = vadd.f32 %v1267_v39, %v3684_v30  ;;  %v3687_v25 = vld [vmem:[#allocation16_spill] sm:$0xff] }
 0x77d   :  { %v1269_v27 = vpop.f32.mrf.mxu0  ;;  %v2575_v42 = vpop.f32.mrf.mxu1 }
 0x77e   :  { %2872 = vpow2.f32 %v2184_v47  ;;  %v2185_v49 = vmul.f32 -1.442695, %v1312_v45 }
 0x780   :  { %2874 = vpow2.f32 %v2185_v49 }
 0x78b   :  { %v2873_v61 = vpop.eup %2872 }
 0x78c   :  { %v1319_v2 = vadd.f32 1.0, %v2873_v61  ;;  %v2779_v61 = vld [vmem:[#allocation8 + $0x40] sm:$0xff]  }
 0x78d   :  { %v2875_v4 = vpop.eup %2874 }
 0x78e   :  { %2876 = vrcp.f32 %v1319_v2  ;;  %v1320_v7 = vadd.f32 1.0, %v2875_v4  ;;  %v2781_v2 = vld [vmem:[#allocation8 + $0xb0] sm:$0xff]   ;;  %v2782_v4 = vld [vmem:[#allocation8 + $0xa8] sm:$0xff]  }
 0x790   :  { %2878 = vrcp.f32 %v1320_v7  ;;  %v2783_v7 = vld [vmem:[#allocation8 + $0xa0] sm:$0xff]  }
 0x79b   :  { %v2877_v48 = vpop.eup %2876 }
 0x79c   :  { %v1325_v9 = vmul.f32 %v2877_v48, %v1306_v8  ;;  %v2784_v8 = vld [vmem:[#allocation8 + $0x98] sm:$0xff]   ;;  %v2785_v48 = vld [vmem:[#allocation8 + $0x90] sm:$0xff]  }
 0x79d   :  { %v2879_v13 = vpop.eup %2878 }
 0x79e   :  { %v1326_v12 = vadd.f32 %v1325_v9, %v3308_v17  ;;  %v1328_v15 = vsub.f32 1.0, %v2879_v13  ;;  %v1330_v19 = vmul.f32 %v2879_v13, %v3545_v10  ;;  %v2764_v17 = vld [vmem:[#allocation8 + $0x38] sm:$0xff]   ;;  %v2778_v10 = vld [vmem:[#allocation8 + $0x48] sm:$0xff]   ;;  %v2188_v9 = vld [vmem:[%s3672_s5] ss:$0 sm:$0xff] }
 0x7a0   :  { %2880 = vtanh.f32 %v1326_v12 }
 0x7ad   :  { %v2881_v16 = vpop.eup %2880 }
 0x7ae   :  { %v1329_v18 = vmul.f32 %v2881_v16, %v1328_v15 }
 0x7b0   :  { %v3577_v21 = vadd.f32 %v1330_v19, %v1329_v18 }
 0x7b2   :  { %v1335_v22 = vpack.c.bf16 %v3577_v21, %v3577_v21 }
 0x7b4   :  { %1369 = vmatmul.mubr.bf16.vlgmr.msra.gmra.mxu0 %v1335_v22  ;;  %2593 = vmatmul.mubr.bf16.vlgmr.msra.gmra.mxu1 %v1335_v22  ;;  %v2787_v22 = vld [vmem:[#allocation8 + $0x80] sm:$0xff]  }
 0x7b5   :  { %2612 = vmatprep.mubr.msk.bf16.mxu0 %vm3005_vm8, %v3682_v0  ;;  %2632 = vmatprep.mubr.msk.bf16.mxu1 %vm3005_vm8, %v3682_v0 }
 0x7b6   :  { %2597 = vmatpush3.bf16.msra.mxu0 %v2764_v17  ;;  %2617 = vmatpush3.bf16.msra.mxu1 %v2772_v33  ;;  %v2788_v17 = vld [vmem:[#allocation8 + $0xf8] sm:$0xff]  }
 0x7b7   :  { %2598 = vmatprep.subr.bf16.mxu0 %v3682_v0  ;;  %2618 = vmatprep.subr.bf16.mxu1 %v3682_v0 }
 0x7ba   :  { %2599 = vmatpush3.bf16.msra.mxu0 %v2765_v58  ;;  %2619 = vmatpush3.bf16.msra.mxu1 %v2773_v55  ;;  %v2789_v58 = vld [vmem:[#allocation8 + $0xf0] sm:$0xff]  }
 0x7bb   :  { %2600 = vmatprep.subr.bf16.mxu0 %v3682_v0  ;;  %2620 = vmatprep.subr.bf16.mxu1 %v3682_v0 }
 0x7be   :  { %2601 = vmatpush3.bf16.msra.mxu0 %v2766_v5  ;;  %2621 = vmatpush3.bf16.msra.mxu1 %v2774_v6  ;;  %v2790_v5 = vld [vmem:[#allocation8 + $0xe8] sm:$0xff]  }
 0x7bf   :  { %2602 = vmatprep.subr.bf16.mxu0 %v3682_v0  ;;  %2622 = vmatprep.subr.bf16.mxu1 %v3682_v0 }
 0x7c2   :  { %2603 = vmatpush3.bf16.msra.mxu0 %v2767_v43  ;;  %2623 = vmatpush3.bf16.msra.mxu1 %v2775_v31  ;;  %v2791_v43 = vld [vmem:[#allocation8 + $0xe0] sm:$0xff]  }
 0x7c3   :  { %2604 = vmatprep.subr.bf16.mxu0 %v3682_v0  ;;  %2624 = vmatprep.subr.bf16.mxu1 %v3682_v0 }
 0x7c6   :  { %2605 = vmatpush3.bf16.msra.mxu0 %v2768_v32  ;;  %2625 = vmatpush3.bf16.msra.mxu1 %v2776_v63  ;;  %v2792_v32 = vld [vmem:[#allocation8 + $0xd8] sm:$0xff]  }
 0x7c7   :  { %2606 = vmatprep.subr.bf16.mxu0 %v3682_v0  ;;  %2626 = vmatprep.subr.bf16.mxu1 %v3682_v0 }
 0x7ca   :  { %2607 = vmatpush3.bf16.msra.mxu0 %v2769_v50  ;;  %2627 = vmatpush3.bf16.msra.mxu1 %v2777_v46  ;;  %v2793_v50 = vld [vmem:[#allocation8 + $0xd0] sm:$0xff]  }
 0x7cb   :  { %2608 = vmatprep.subr.bf16.mxu0 %v3682_v0  ;;  %2628 = vmatprep.subr.bf16.mxu1 %v3682_v0 }
 0x7ce   :  { %2609 = vmatpush3.bf16.msra.mxu0 %v2770_v44  ;;  %2629 = vmatpush3.bf16.msra.mxu1 %v2778_v10  ;;  %v2197_v44 = vld [vmem:[%s3672_s5 + $0x1] ss:$0 sm:$0xff]  ;;  %v2794_v10 = vld [vmem:[#allocation8 + $0xc8] sm:$0xff]  }
 0x7cf   :  { %2610 = vmatprep.subr.bf16.mxu0 %v3682_v0  ;;  %2630 = vmatprep.subr.bf16.mxu1 %v3682_v0 }
 0x7d2   :  { %2611 = vmatpush3.bf16.msra.mxu0 %v2771_v3  ;;  %2631 = vmatpush3.bf16.msra.mxu1 %v2779_v61  ;;  %v2811_v61 = vld [vmem:[#allocation8 + $0x140] sm:$0xff]  }
 0x7d3   :  { %2636 = vmatprep.subr.bf16.mxu0 %v3682_v0  ;;  %2656 = vmatprep.subr.bf16.mxu1 %v3682_v0 }
 0x874   :  { %v1370_v57 = vpop.f32.mrf.mxu0  ;;  %v1411_v14 = vpop.f32.mrf.mxu1 }
 0x875   :  { %v1371_v34 = vadd.f32 %v1370_v57, %v3296_v54  ;;  %v1412_v24 = vadd.f32 %v1411_v14, %v3310_v60  ;;  %v2780_v60 = vld [vmem:[#allocation8 + $0xb8] sm:$0xff]   ;;  %v2795_v57 = vld [vmem:[#allocation8 + $0xc0] sm:$0xff]  }
 0x876   :  { %v1372_v35 = vpop.f32.mrf.mxu0  ;;  %v2594_v52 = vpop.f32.mrf.mxu1  ;;  %v2796_v14 = vld [vmem:[#allocation8 + $0x138] sm:$0xff]  }
 0x877   :  { %v1417_v37 = vadd.f32 %v1371_v34, %v3685_v1  ;;  %v1373_v51 = vadd.f32 %v1372_v35, %v3303_v62  ;;  %v2797_v34 = vld [vmem:[#allocation8 + $0x130] sm:$0xff]   ;;  %v2798_v35 = vld [vmem:[#allocation8 + $0x128] sm:$0xff]   ;;  %v2799_v52 = vld [vmem:[#allocation8 + $0x120] sm:$0xff]  }
 0x878   :  { %v1374_v59 = vpop.f32.mrf.mxu0  ;;  %v1414_v38 = vpop.f32.mrf.mxu1  ;;  %v2800_v1 = vld [vmem:[#allocation8 + $0x118] sm:$0xff]  }
 0x879   :  { %v2186_v40 = vmul.f32 -1.442695, %v1417_v37  ;;  %v1418_v53 = vadd.f32 %v1373_v51, %v3686_v20  ;;  %v2801_v37 = vld [vmem:[#allocation8 + $0x110] sm:$0xff]   ;;  %v2206_v59 = vld [vmem:[%s3672_s5 + $0x2] ss:$0 sm:$0xff] }
 0x87a   :  { %v1375_v41 = vpop.f32.mrf.mxu0  ;;  %v2595_v11 = vpop.f32.mrf.mxu1 }
 0x87b   :  { %2882 = vpow2.f32 %v2186_v40  ;;  %v2187_v23 = vmul.f32 -1.442695, %v1418_v53 }
 0x87d   :  { %2884 = vpow2.f32 %v2187_v23  ;;  %v2802_v23 = vld [vmem:[#allocation8 + $0x108] sm:$0xff]  }
 0x888   :  { %v2883_v26 = vpop.eup %2882 }
 0x889   :  { %v1425_v28 = vadd.f32 1.0, %v2883_v26  ;;  %v2803_v26 = vld [vmem:[#allocation8 + $0x100] sm:$0xff]  }
 0x88a   :  { %v2885_v54 = vpop.eup %2884 }
 0x88b   :  { %2886 = vrcp.f32 %v1425_v28  ;;  %v1426_v36 = vadd.f32 1.0, %v2885_v54  ;;  %v2804_v28 = vld [vmem:[#allocation8 + $0x178] sm:$0xff]   ;;  %v2805_v54 = vld [vmem:[#allocation8 + $0x170] sm:$0xff]  }
 0x88d   :  { %2888 = vrcp.f32 %v1426_v36  ;;  %v2806_v36 = vld [vmem:[#allocation8 + $0x168] sm:$0xff]  }
 0x898   :  { %v2887_v29 = vpop.eup %2886 }
 0x899   :  { %v1431_v56 = vmul.f32 %v2887_v29, %v1412_v24  ;;  %v2807_v24 = vld [vmem:[#allocation8 + $0x160] sm:$0xff]   ;;  %v2808_v29 = vld [vmem:[#allocation8 + $0x158] sm:$0xff]  }
 0x89a   :  { %v2889_v62 = vpop.eup %2888 }
 0x89b   :  { %v1432_v47 = vadd.f32 %v3687_v25, %v1431_v56  ;;  %v1434_v39 = vsub.f32 1.0, %v2889_v62  ;;  %v1436_v30 = vmul.f32 %v2889_v62, %v3577_v21  ;;  %v2786_v21 = vld [vmem:[#allocation8 + $0x88] sm:$0xff]   ;;  %v2809_v56 = vld [vmem:[#allocation8 + $0x150] sm:$0xff]   ;;  %v2215_v25 = vld [vmem:[%s3672_s5 + $0x3] ss:$0 sm:$0xff] }
 0x89d   :  { %2890 = vtanh.f32 %v1432_v47 }
 0x8aa   :  { %v2891_v27 = vpop.eup %2890 }
 0x8ab   :  { %v1435_v42 = vmul.f32 %v2891_v27, %v1434_v39 }
 0x8ad   :  { %v1437_v45 = vadd.f32 %v1436_v30, %v1435_v42 }
 0x8af   :  { %v1438_v49 = vpack.c.bf16 %v1437_v45, %v1437_v45 }
 0x8b1   :  { %2613 = vmatmul.mubr.bf16.vlgmr.msra.gmra.mxu0 %v1438_v49  ;;  %v2810_v49 = vld [vmem:[#allocation8 + $0x148] sm:$0xff]  }
 0x8b2   :  { %2652 = vmatprep.mubr.msk.bf16.mxu0 %vm3005_vm8, %v3682_v0  ;;  %2637 = vmatpush3.bf16.msra.mxu0 %v2780_v60  ;;  %v2224_v60 = vld [vmem:[%s3672_s5 + $0x4] ss:$0 sm:$0xff] }
 0x8b3   :  { %2638 = vmatprep.subr.bf16.mxu0 %v3682_v0 }
 0x8b6   :  { %2639 = vmatpush3.bf16.msra.mxu0 %v2781_v2 }
 0x8b7   :  { %2640 = vmatprep.subr.bf16.mxu0 %v3682_v0 }
 0x8ba   :  { %2641 = vmatpush3.bf16.msra.mxu0 %v2782_v4 }
 0x8bb   :  { %2642 = vmatprep.subr.bf16.mxu0 %v3682_v0 }
 0x8be   :  { %2643 = vmatpush3.bf16.msra.mxu0 %v2783_v7 }
 0x8bf   :  { %2644 = vmatprep.subr.bf16.mxu0 %v3682_v0 }
 0x8c2   :  { %2645 = vmatpush3.bf16.msra.mxu0 %v2784_v8 }
 0x8c3   :  { %2646 = vmatprep.subr.bf16.mxu0 %v3682_v0 }
 0x8c6   :  { %2647 = vmatpush3.bf16.msra.mxu0 %v2785_v48 }
 0x8c7   :  { %2648 = vmatprep.subr.bf16.mxu0 %v3682_v0 }
 0x8ca   :  { %2649 = vmatpush3.bf16.msra.mxu0 %v2786_v21 }
 0x8cb   :  { %2650 = vmatprep.subr.bf16.mxu0 %v3682_v0 }
 0x8ce   :  { %2651 = vmatpush3.bf16.msra.mxu0 %v2787_v22 }
 0x8cf   :  { %2676 = vmatprep.subr.bf16.mxu0 %v3682_v0 }
 0x971   :  { %v1542_v12 = vpop.f32.mrf.mxu0 }
 0x972   :  { %v1543_v13 = vadd.f32 %v2188_v9, %v1542_v12 }
 0x973   :  { %v2614_v15 = vpop.f32.mrf.mxu0 }
 0x974   :  { %v1548_v16 = vpack.c.bf16 %v1543_v13, %v1543_v13  ;;  %v2233_v13 = vld [vmem:[%s3672_s5 + $0x5] ss:$0 sm:$0xff] }
 0x975   :  { %v1545_v18 = vpop.f32.mrf.mxu0 }
 0x976   :  { %2633 = vmatmul.mubr.bf16.vlgmr.msra.gmra.mxu1 %v1548_v16 }
 0x977   :  { %v2615_v19 = vpop.f32.mrf.mxu0  ;;  %2672 = vmatprep.mubr.msk.bf16.mxu1 %vm3005_vm8, %v3682_v0  ;;  %2657 = vmatpush3.bf16.msra.mxu1 %v2788_v17 }
 0x978   :  { %2658 = vmatprep.subr.bf16.mxu1 %v3682_v0 }
 0x97b   :  { %2659 = vmatpush3.bf16.msra.mxu1 %v2789_v58 }
 0x97c   :  { %2660 = vmatprep.subr.bf16.mxu1 %v3682_v0 }
 0x97f   :  { %2661 = vmatpush3.bf16.msra.mxu1 %v2790_v5 }
 0x980   :  { %2662 = vmatprep.subr.bf16.mxu1 %v3682_v0 }
 0x983   :  { %2663 = vmatpush3.bf16.msra.mxu1 %v2791_v43 }
 0x984   :  { %2664 = vmatprep.subr.bf16.mxu1 %v3682_v0 }
 0x987   :  { %2665 = vmatpush3.bf16.msra.mxu1 %v2792_v32 }
 0x988   :  { %2666 = vmatprep.subr.bf16.mxu1 %v3682_v0 }
 0x98b   :  { %2667 = vmatpush3.bf16.msra.mxu1 %v2793_v50 }
 0x98c   :  { %2668 = vmatprep.subr.bf16.mxu1 %v3682_v0 }
 0x98f   :  { %2669 = vmatpush3.bf16.msra.mxu1 %v2794_v10 }
 0x990   :  { %2670 = vmatprep.subr.bf16.mxu1 %v3682_v0 }
 0x993   :  { %2671 = vmatpush3.bf16.msra.mxu1 %v2795_v57 }
 0x994   :  { %2696 = vmatprep.subr.bf16.mxu1 %v3682_v0 }
 0xa36   :  { %v1653_v3 = vpop.f32.mrf.mxu1 }
 0xa37   :  { %v1654_v33 = vadd.f32 %v2197_v44, %v1653_v3 }
 0xa38   :  { %v2634_v55 = vpop.f32.mrf.mxu1 }
 0xa39   :  { %v1659_v6 = vmax.f32 %v1654_v33, 0.0 }
 0xa3a   :  { %v1656_v31 = vpop.f32.mrf.mxu1 }
 0xa3b   :  { %v1660_v63 = vpack.c.bf16 %v1659_v6, %v1659_v6 }
 0xa3c   :  { %v2635_v46 = vpop.f32.mrf.mxu1 }
 0xa3d   :  { %2653 = vmatmul.mubr.bf16.vlgmr.msra.gmra.mxu0 %v1660_v63 }
 0xa3e   :  { %2692 = vmatprep.mubr.msk.bf16.mxu0 %vm3005_vm8, %v3682_v0  ;;  %2677 = vmatpush3.bf16.msra.mxu0 %v2796_v14 }
 0xa3f   :  { %2678 = vmatprep.subr.bf16.mxu0 %v3682_v0 }
 0xa42   :  { %2679 = vmatpush3.bf16.msra.mxu0 %v2797_v34 }
 0xa43   :  { %2680 = vmatprep.subr.bf16.mxu0 %v3682_v0 }
 0xa46   :  { %2681 = vmatpush3.bf16.msra.mxu0 %v2798_v35 }
 0xa47   :  { %2682 = vmatprep.subr.bf16.mxu0 %v3682_v0 }
 0xa4a   :  { %2683 = vmatpush3.bf16.msra.mxu0 %v2799_v52 }
 0xa4b   :  { %2684 = vmatprep.subr.bf16.mxu0 %v3682_v0 }
 0xa4e   :  { %2685 = vmatpush3.bf16.msra.mxu0 %v2800_v1 }
 0xa4f   :  { %2686 = vmatprep.subr.bf16.mxu0 %v3682_v0 }
 0xa52   :  { %2687 = vmatpush3.bf16.msra.mxu0 %v2801_v37 }
 0xa53   :  { %2688 = vmatprep.subr.bf16.mxu0 %v3682_v0 }
 0xa56   :  { %2689 = vmatpush3.bf16.msra.mxu0 %v2802_v23 }
 0xa57   :  { %2690 = vmatprep.subr.bf16.mxu0 %v3682_v0 }
 0xa5a   :  { %2691 = vmatpush3.bf16.msra.mxu0 %v2803_v26 }
 0xafd   :  { %v1765_v38 = vpop.f32.mrf.mxu0 }
 0xafe   :  { %v1766_v40 = vadd.f32 %v2206_v59, %v1765_v38 }
 0xaff   :  { %v2654_v51 = vpop.f32.mrf.mxu0 }
 0xb00   :  { %v1771_v41 = vmax.f32 %v1766_v40, 0.0 }
 0xb01   :  { %v1768_v11 = vpop.f32.mrf.mxu0 }
 0xb02   :  { %v1772_v20 = vpack.c.bf16 %v1771_v41, %v1771_v41 }
 0xb03   :  { %v2655_v53 = vpop.f32.mrf.mxu0 }
 0xb04   :  { %2673 = vmatmul.mubr.bf16.vlgmr.msra.gmra.mxu1 %v1772_v20 }
 0xb05   :  { %2712 = vmatprep.mubr.msk.bf16.mxu1 %vm3005_vm8, %v3682_v0  ;;  %2697 = vmatpush3.bf16.msra.mxu1 %v2804_v28 }
 0xb06   :  { %2698 = vmatprep.subr.bf16.mxu1 %v3682_v0 }
 0xb09   :  { %2699 = vmatpush3.bf16.msra.mxu1 %v2805_v54 }
 0xb0a   :  { %2700 = vmatprep.subr.bf16.mxu1 %v3682_v0 }
 0xb0d   :  { %2701 = vmatpush3.bf16.msra.mxu1 %v2806_v36 }
 0xb0e   :  { %2702 = vmatprep.subr.bf16.mxu1 %v3682_v0 }
 0xb11   :  { %2703 = vmatpush3.bf16.msra.mxu1 %v2807_v24 }
 0xb12   :  { %2704 = vmatprep.subr.bf16.mxu1 %v3682_v0 }
 0xb15   :  { %2705 = vmatpush3.bf16.msra.mxu1 %v2808_v29 }
 0xb16   :  { %2706 = vmatprep.subr.bf16.mxu1 %v3682_v0 }
 0xb19   :  { %2707 = vmatpush3.bf16.msra.mxu1 %v2809_v56 }
 0xb1a   :  { %2708 = vmatprep.subr.bf16.mxu1 %v3682_v0 }
 0xb1d   :  { %2709 = vmatpush3.bf16.msra.mxu1 %v2810_v49 }
 0xb1e   :  { %2710 = vmatprep.subr.bf16.mxu1 %v3682_v0 }
 0xb21   :  { %2711 = vmatpush3.bf16.msra.mxu1 %v2811_v61 }
 0xbc4   :  { %v1877_v47 = vpop.f32.mrf.mxu1 }
 0xbc5   :  { %v1878_v62 = vadd.f32 %v2215_v25, %v1877_v47 }
 0xbc6   :  { %v2674_v39 = vpop.f32.mrf.mxu1 }
 0xbc7   :  { %v1883_v27 = vmax.f32 %v1878_v62, 0.0 }
 0xbc8   :  { %v1880_v42 = vpop.f32.mrf.mxu1 }
 0xbc9   :  { %v1884_v30 = vpack.c.bf16 %v1883_v27, %v1883_v27 }
 0xbca   :  { %v2675_v45 = vpop.f32.mrf.mxu1 }
 0xbcb   :  { %2693 = vmatmul.mubr.bf16.vlgmr.msra.gmra.mxu0 %v1884_v30 }
 0xc8b   :  { %v1989_v2 = vpop.f32.mrf.mxu0 }
 0xc8c   :  { %v1990_v4 = vadd.f32 %v2224_v60, %v1989_v2 }
 0xc8d   :  { %v2694_v7 = vpop.f32.mrf.mxu0 }
 0xc8e   :  { %v1995_v8 = vmax.f32 %v1990_v4, 0.0 }
 0xc8f   :  { %v1992_v48 = vpop.f32.mrf.mxu0 }
 0xc90   :  { %v1996_v9 = vpack.c.bf16 %v1995_v8, %v1995_v8 }
 0xc91   :  { %v2695_v12 = vpop.f32.mrf.mxu0 }
 0xc92   :  { %2713 = vmatmul.mubr.bf16.vlgmr.msra.gmra.mxu1 %v1996_v9 }
 0xd52   :  { %v2101_v0 = vpop.f32.mrf.mxu1 }
 0xd53   :  { %v2102_v15 = vadd.f32 %v2233_v13, %v2101_v0 }
 0xd54   :  { %v2714_v16 = vpop.f32.mrf.mxu1 }
 0xd55   :  { %2107 = vst [vmem:[#allocation9] sm:$0xff] %v2102_v15 }
 0xd56   :  { %v2104_v18 = vpop.f32.mrf.mxu1 }
 0xd57   :  { %2978 = shalt.err (!%p2975_p5)
}
 0xd58   :  { %2117 = dma.vmem_to_hbm [thread:$0]  %s2115_s18, 128, %s3673_s6, [#allocation5]   ;;  %v2715_v19 = vpop.f32.mrf.mxu1 }
 0xd59   :  { %2991 = dma.done.wait [#allocation5], 128  }
 0xd5a   :  { %2992 = vsyncadd [#allocation5], 4294967168 }
 0xd5b   :  { %2121 = vsyncpa [#allocation4], 1 }
 0xd5c   :  { %2122 = vsyncpa [#allocation7], 1 }
 0xd5d   :  { %2123 = vsyncpa [#allocation5], 1 }

</bundles_post_ra>
